<compile_context>
chip_gen: v7x
topology: tpu7x:2x2x1
jax: 0.10.0
libtpu: 0.0.40
codegen_flags: <defaults>
</compile_context>

<pallas_src>
import functools

import jax
import jax.numpy as jnp
import numpy as np
from jax.experimental import pallas as pl
from jax.experimental.pallas import tpu as pltpu

# ---- module configuration (synthetic, deterministic, small but lane-dense) ----
IN_FEATURES = 128          # K  (lane-dense x)
OUT_FEATURES = 256         # N  (lane-dense output, 2 tiles of 128)
R = 8
LORA_ALPHA = 16
SCALING = LORA_ALPHA / R
BATCH = 8                  # NOTE: at real sizes, batch tokens/adapters so M >= 128

# quant_param for HQQ Quantizer.quantize(..., bitpack=False)
NBITS = 4
GROUP_SIZE = 16            # consecutive in-features per group (never cross rows)
ROUND_ZERO = True
MAX_V = float(2 ** NBITS - 1)
# TODO(synk): HQQ 'optimize=True' (optimize_weights_proximal shrinkage loop) not
# implemented; quant_param uses optimize=False which is the plain quant path.

TILE_N = 128               # out_features tile per grid step (lane-dense store)

assert IN_FEATURES % GROUP_SIZE == 0
assert OUT_FEATURES % TILE_N == 0

_HIGHEST = jax.lax.Precision.HIGHEST


def _make_kernel(gemm_dtype):
    use_f32_gemm = jnp.dtype(gemm_dtype) == jnp.dtype(jnp.float32)

    def kernel(x_ref, wt_ref, a_ref, b_ref, bias_ref, o_ref):
        # Effective weight in transposed layout (no .T anywhere):
        #   W_t = W_base^T + scaling * (A @ B)   -> (IN_FEATURES, TILE_N), f32
        ab = jnp.dot(a_ref[...], b_ref[...],
                     preferred_element_type=jnp.float32,
                     precision=_HIGHEST)                       # (IN, TILE_N)
        w_t = wt_ref[...] + ab * SCALING

        # HQQ group-wise fake quant, fully vectorized: each group is
        # GROUP_SIZE consecutive in-feature rows of one out column, i.e. a
        # sublane-group reduction while the lane axis stays 128-wide.
        n_groups = IN_FEATURES // GROUP_SIZE
        wg = w_t.reshape(n_groups, GROUP_SIZE, TILE_N)
        wmin = jnp.min(wg, axis=1, keepdims=True)              # (G, 1, TILE_N)
        wmax = jnp.max(wg, axis=1, keepdims=True)
        scale = jnp.minimum(MAX_V / (wmax - wmin), 2e4)        # scale.clamp(max=2e4)
        zero = -wmin * scale
        if ROUND_ZERO:
            zero = jnp.round(zero)
        wq = jnp.clip(jnp.round(wg * scale + zero), 0.0, MAX_V)
        w_est = ((wq - zero) * (1.0 / scale)).reshape(IN_FEATURES, TILE_N)

        # out = x @ W_est + bias   (lane-dense [B, TILE_N] store).
        # Quant math stays f32; only MXU operands are cast for the bf16 path.
        if use_f32_gemm:
            out = jnp.dot(x_ref[...], w_est,
                          preferred_element_type=jnp.float32,
                          precision=_HIGHEST)
        else:
            out = jnp.dot(x_ref[...].astype(gemm_dtype),
                          w_est.astype(gemm_dtype),
                          preferred_element_type=jnp.float32)
        o_ref[...] = (out + bias_ref[...]).astype(o_ref.dtype)

    return kernel


@functools.partial(jax.jit, static_argnames=("gemm_dtype",))
def hqq_lora_fakequant_forward(x, w_base, lora_A, lora_B, bias_2d,
                               gemm_dtype=jnp.float32):
    """x: (B, in); w_base: (out, in) torch nn.Linear layout; lora_A: (in, r);
    lora_B: (r, out); bias_2d: (1, out)."""
    b = x.shape[0]
    w_base_t = w_base.T        # (in, out): layout plumbing outside the kernel
    n_tiles = OUT_FEATURES // TILE_N
    kernel = _make_kernel(gemm_dtype)
    return pl.pallas_call(
        kernel,
        out_shape=jax.ShapeDtypeStruct((b, OUT_FEATURES), x.dtype),
        grid=(n_tiles,),
        in_specs=[
            pl.BlockSpec((b, IN_FEATURES), lambda j: (0, 0)),      # x (resident)
            pl.BlockSpec((IN_FEATURES, TILE_N), lambda j: (0, j)),  # W_base^T tile
            pl.BlockSpec((IN_FEATURES, R), lambda j: (0, 0)),       # lora_A
            pl.BlockSpec((R, TILE_N), lambda j: (0, j)),            # lora_B tile
            pl.BlockSpec((1, TILE_N), lambda j: (0, j)),            # bias tile
        ],
        out_specs=pl.BlockSpec((b, TILE_N), lambda j: (0, j)),
        compiler_params=pltpu.CompilerParams(
            dimension_semantics=("parallel",)),
    )(x, w_base_t, lora_A, lora_B, bias_2d)


def reference_forward(x, w_base, lora_A, lora_B, bias):
    """Pure-JAX reference mirroring the PyTorch forward (f32 throughout)."""
    W = w_base + SCALING * jnp.matmul(lora_A, lora_B, precision=_HIGHEST).T
    Wg = W.reshape(-1, GROUP_SIZE)
    wmin = Wg.min(axis=1, keepdims=True)
    wmax = Wg.max(axis=1, keepdims=True)
    scale = jnp.minimum(MAX_V / (wmax - wmin), 2e4)
    zero = -wmin * scale
    if ROUND_ZERO:
        zero = jnp.round(zero)
    Wq = jnp.clip(jnp.round(Wg * scale + zero), 0.0, MAX_V)
    W_est = ((Wq - zero) * (1.0 / scale)).reshape(OUT_FEATURES, IN_FEATURES)
    return jnp.matmul(x, W_est.T, precision=_HIGHEST) + bias


if __name__ == "__main__":
    key = jax.random.PRNGKey(0)
    k_x, k_w, k_a, k_b, k_bias = jax.random.split(key, 5)

    x = jax.random.normal(k_x, (BATCH, IN_FEATURES), dtype=jnp.float32)
    w_base = jax.random.normal(k_w, (OUT_FEATURES, IN_FEATURES),
                               dtype=jnp.float32) * 0.1
    # kaiming-uniform-ish lora_A; lora_B nonzero (as if supplied via 'lora_init')
    bound_a = float(np.sqrt(1.0 / IN_FEATURES))
    lora_A = jax.random.uniform(k_a, (IN_FEATURES, R), dtype=jnp.float32,
                                minval=-bound_a, maxval=bound_a)
    lora_B = jax.random.normal(k_b, (R, OUT_FEATURES), dtype=jnp.float32) * 0.05
    bias = jax.random.normal(k_bias, (OUT_FEATURES,), dtype=jnp.float32) * 0.01
    bias_2d = bias.reshape(1, OUT_FEATURES)

    ref = reference_forward(x, w_base, lora_A, lora_B, bias)

    # Exact f32-GEMM path: strict check of layout + fake-quant semantics.
    out_f32 = jax.block_until_ready(
        hqq_lora_fakequant_forward(x, w_base, lora_A, lora_B, bias_2d,
                                   gemm_dtype=jnp.float32))
    np.testing.assert_allclose(np.asarray(out_f32), np.asarray(ref),
                               rtol=1e-4, atol=1e-4)

    # bf16 MXU-operand path (perf path on v6e/v7x; quant math stays f32,
    # accumulation f32) -> compare vs f32 reference with bf16-level tolerance.
    out_bf16 = jax.block_until_ready(
        hqq_lora_fakequant_forward(x, w_base, lora_A, lora_B, bias_2d,
                                   gemm_dtype=jnp.bfloat16))
    np.testing.assert_allclose(np.asarray(out_bf16), np.asarray(ref),
                               rtol=5e-2, atol=5e-2)

    print("KERNEL_OK")
</pallas_src>

<mosaic_0001>
module attributes {stable_mosaic.version = 11 : i64} {
  func.func @kernel(%arg0: i32, %arg1: memref<8x128xf32, #tpu.memory_space<vmem>>, %arg2: memref<128x128xf32, #tpu.memory_space<vmem>>, %arg3: memref<128x8xf32, #tpu.memory_space<vmem>>, %arg4: memref<8x128xf32, #tpu.memory_space<vmem>>, %arg5: memref<1x128xf32, #tpu.memory_space<vmem>>, %arg6: memref<8x128xf32, #tpu.memory_space<vmem>>) attributes {dimension_semantics = [#tpu.dimension_semantics<parallel>], iteration_bounds = array<i64: 2>, scalar_prefetch = 0 : i64, scratch_operands = 0 : i64, tpu.core_type = #tpu.core_type<tc>, window_params = [{pipeline_mode = #tpu.pipeline_mode<synchronous>, transform_indices = @transform_0, window_bounds = array<i64: 8, 128>}, {transform_indices = @transform_1, window_bounds = array<i64: 128, 128>}, {pipeline_mode = #tpu.pipeline_mode<synchronous>, transform_indices = @transform_2, window_bounds = array<i64: 128, 8>}, {transform_indices = @transform_3, window_bounds = array<i64: 8, 128>}, {transform_indices = @transform_4, window_bounds = array<i64: 1, 128>}, {transform_indices = @transform_5, window_bounds = array<i64: 8, 128>}]} {
    %c0 = arith.constant 0 : index
    %c0_0 = arith.constant 0 : index
    %0 = vector.load %arg3[%c0, %c0_0] : memref<128x8xf32, #tpu.memory_space<vmem>>, vector<128x8xf32>
    %c0_1 = arith.constant 0 : index
    %c0_2 = arith.constant 0 : index
    %1 = vector.load %arg4[%c0_1, %c0_2] : memref<8x128xf32, #tpu.memory_space<vmem>>, vector<8x128xf32>
    %cst = arith.constant dense<0.000000e+00> : vector<128x128xf32>
    %2 = tpu.matmul %0, %1, %cst {dimension_numbers = #tpu.dot_dimension_numbers<[1], [0], [0], [1], [0, 0, 1, 1], [], []>, precision = #tpu.contract_precision<fp32>} : vector<128x8xf32>, vector<8x128xf32>, vector<128x128xf32> -> vector<128x128xf32>
    %c0_3 = arith.constant 0 : index
    %c0_4 = arith.constant 0 : index
    %3 = vector.load %arg2[%c0_3, %c0_4] : memref<128x128xf32, #tpu.memory_space<vmem>>, vector<128x128xf32>
    %cst_5 = arith.constant 2.000000e+00 : f32
    %4 = vector.broadcast %cst_5 : f32 to vector<128x128xf32>
    %5 = arith.mulf %2, %4 : vector<128x128xf32>
    %6 = arith.addf %3, %5 : vector<128x128xf32>
    %7 = vector.shape_cast %6 : vector<128x128xf32> to vector<8x16x128xf32>
    %cst_6 = arith.constant dense<0x7F800000> : vector<8x128xf32>
    %8 = vector.multi_reduction <minimumf>, %7, %cst_6 [1] : vector<8x16x128xf32> to vector<8x128xf32>
    %9 = vector.shape_cast %8 : vector<8x128xf32> to vector<8x1x128xf32>
    %cst_7 = arith.constant dense<0xFF800000> : vector<8x128xf32>
    %10 = vector.multi_reduction <maximumf>, %7, %cst_7 [1] : vector<8x16x128xf32> to vector<8x128xf32>
    %11 = vector.shape_cast %10 : vector<8x128xf32> to vector<8x1x128xf32>
    %12 = arith.subf %11, %9 : vector<8x1x128xf32>
    %cst_8 = arith.constant 1.500000e+01 : f32
    %13 = vector.broadcast %cst_8 : f32 to vector<8x1x128xf32>
    %14 = arith.divf %13, %12 : vector<8x1x128xf32>
    %cst_9 = arith.constant 2.000000e+04 : f32
    %15 = vector.broadcast %cst_9 : f32 to vector<8x1x128xf32>
    %16 = arith.minimumf %14, %15 : vector<8x1x128xf32>
    %cst_10 = arith.constant 0.000000e+00 : f32
    %17 = vector.broadcast %cst_10 : f32 to vector<8x1x128xf32>
    %18 = arith.subf %17, %9 : vector<8x1x128xf32>
    %19 = arith.mulf %18, %16 : vector<8x1x128xf32>
    %20 = math.roundeven %19 : vector<8x1x128xf32>
    %21 = vector.broadcast %16 : vector<8x1x128xf32> to vector<8x16x128xf32>
    %22 = arith.mulf %7, %21 : vector<8x16x128xf32>
    %23 = vector.broadcast %20 : vector<8x1x128xf32> to vector<8x16x128xf32>
    %24 = arith.addf %22, %23 : vector<8x16x128xf32>
    %25 = math.roundeven %24 : vector<8x16x128xf32>
    %cst_11 = arith.constant 0.000000e+00 : f32
    %cst_12 = arith.constant 1.500000e+01 : f32
    %26 = vector.broadcast %cst_11 : f32 to vector<8x16x128xf32>
    %27 = arith.maximumf %26, %25 : vector<8x16x128xf32>
    %28 = vector.broadcast %cst_12 : f32 to vector<8x16x128xf32>
    %29 = arith.minimumf %28, %27 : vector<8x16x128xf32>
    %30 = vector.broadcast %20 : vector<8x1x128xf32> to vector<8x16x128xf32>
    %31 = arith.subf %29, %30 : vector<8x16x128xf32>
    %cst_13 = arith.constant 1.000000e+00 : f32
    %32 = vector.broadcast %cst_13 : f32 to vector<8x1x128xf32>
    %33 = arith.divf %32, %16 : vector<8x1x128xf32>
    %34 = vector.broadcast %33 : vector<8x1x128xf32> to vector<8x16x128xf32>
    %35 = arith.mulf %31, %34 : vector<8x16x128xf32>
    %36 = vector.shape_cast %35 : vector<8x16x128xf32> to vector<128x128xf32>
    %c0_14 = arith.constant 0 : index
    %c0_15 = arith.constant 0 : index
    %37 = vector.load %arg1[%c0_14, %c0_15] : memref<8x128xf32, #tpu.memory_space<vmem>>, vector<8x128xf32>
    %cst_16 = arith.constant dense<0.000000e+00> : vector<8x128xf32>
    %38 = tpu.matmul %37, %36, %cst_16 {dimension_numbers = #tpu.dot_dimension_numbers<[1], [0], [0], [1], [0, 0, 1, 1], [], []>, precision = #tpu.contract_precision<fp32>} : vector<8x128xf32>, vector<128x128xf32>, vector<8x128xf32> -> vector<8x128xf32>
    %c0_17 = arith.constant 0 : index
    %c0_18 = arith.constant 0 : index
    %39 = vector.load %arg5[%c0_17, %c0_18] : memref<1x128xf32, #tpu.memory_space<vmem>>, vector<1x128xf32>
    %40 = vector.broadcast %39 : vector<1x128xf32> to vector<8x128xf32>
    %41 = arith.addf %38, %40 : vector<8x128xf32>
    %c0_19 = arith.constant 0 : index
    %c0_20 = arith.constant 0 : index
    %42 = vector.load %arg6[%c0_19, %c0_20] : memref<8x128xf32, #tpu.memory_space<vmem>>, vector<8x128xf32>
    tpu.vector_store %arg6[%c0_19, %c0_20], %41 {strides = array<i32>} : memref<8x128xf32, #tpu.memory_space<vmem>>, vector<8x128xf32>,
    return
  }
  func.func @transform_0(%arg0: i32) -> (i32, i32) {
    %c0_i32 = arith.constant 0 : i32
    %c0_i32_0 = arith.constant 0 : i32
    %c0_i32_1 = arith.constant 0 : i32
    return %c0_i32, %c0_i32_0 : i32, i32
  }
  func.func @transform_1(%arg0: i32) -> (i32, i32) {
    %c0_i32 = arith.constant 0 : i32
    %c0_i32_0 = arith.constant 0 : i32
    return %c0_i32, %arg0 : i32, i32
  }
  func.func @transform_2(%arg0: i32) -> (i32, i32) {
    %c0_i32 = arith.constant 0 : i32
    %c0_i32_0 = arith.constant 0 : i32
    %c0_i32_1 = arith.constant 0 : i32
    return %c0_i32, %c0_i32_0 : i32, i32
  }
  func.func @transform_3(%arg0: i32) -> (i32, i32) {
    %c0_i32 = arith.constant 0 : i32
    %c0_i32_0 = arith.constant 0 : i32
    return %c0_i32, %arg0 : i32, i32
  }
  func.func @transform_4(%arg0: i32) -> (i32, i32) {
    %c0_i32 = arith.constant 0 : i32
    %c0_i32_0 = arith.constant 0 : i32
    return %c0_i32, %arg0 : i32, i32
  }
  func.func @transform_5(%arg0: i32) -> (i32, i32) {
    %c0_i32 = arith.constant 0 : i32
    %c0_i32_0 = arith.constant 0 : i32
    return %c0_i32, %arg0 : i32, i32
  }
}

</mosaic_0001>

<bundles_post_ra>
// kernel: hqq_lora_fakequant_forward.1
= control target key start
LH: loop header
LB: loop body
LE: loop exit
PB: predicated region body
PF: predicated region fallthrough
CT: control target
= control target key end

     0   :  { %10 = vsyncpa [#allocation4], 0  ;;  %s4558_s0 = inlined_call_operand.vmem [shape: f32[8,128], index: 0, kind: input, shape index: {}]   ;;  %s4559_s1 = inlined_call_operand.vmem [shape: f32[128,256], index: 1, kind: input, shape index: {}]   ;;  %s4560_s2 = inlined_call_operand.vmem [shape: f32[128,8], index: 2, kind: input, shape index: {}]   ;;  %s4561_s3 = inlined_call_operand.vmem [shape: f32[8,256], index: 3, kind: input, shape index: {}]   ;;  %s4562_s4 = inlined_call_operand.vmem [shape: f32[1,256], index: 4, kind: input, shape index: {}]   ;;  %s4563_s5 = inlined_call_operand.hbm [shape: f32[8,256], index: 5, kind: output, shape index: {}]  }
   0x1   :  { %12 = vsyncpa [#allocation4 + $0x1], 0  ;;  %s3614_s18 = smov 0   ;;  %s3616_s19 = smov 0  }
   0x2   :  { %s3618_s20 = smov 0   ;;  %s3620_s21 = smov 0  }
   0x3 LB: > { %s3635_s22 = sadd.s32 4294967295, %s3578_s21   ;;  %s2599_s23 = sadd.s32 4294967294, %s3578_s21   ;;  %s3578_s21 = sphi %s3620_s21, %s4577_s21   ;;  %s3574_s20 = sphi %s3618_s20, %s4576_s20   ;;  %s3570_s19 = sphi %s3616_s19, %s4575_s19   ;;  %s3566_s18 = sphi %s3614_s18, %s4574_s18  }
   0x4   : > { %s3639_s24 = sadd.s32 1, %s3578_s21   ;;  %s46_s25 = sadd.s32 1, %s3574_s20 }
   0x5   : > { %s43_s26 = ssub.s32 %s3578_s21, %s3639_s24  ;;  %p53_p0 = scmp.ne.s32.totalorder %s3574_s20, %s3570_s19 }
   0x6   : > { %p44_p1 = scmp.eq.s32.totalorder %s43_s26, 0  ;;  %p54_p2 = scmp.eq.s32.totalorder %s3578_s21, 0 }
   0x7   : > { %p156_p3 = scmp.eq.s32.totalorder %s3635_s22, 1  ;;  %p161_p4 = scmp.ne.s32.totalorder %s3570_s19, %s3566_s18 }
   0x8   : > { %s3651_s27 = scalar_select %p44_p1, %s3574_s20, %s46_s25  }
   0x9   : > { %p55_p5 = por %p54_p2, %p53_p0  ;;  %p3653_p6 = por %p156_p3, %p53_p0 }
   0xa   : > { %p162_p7 = scmp.eq.s32.totalorder %s2599_s23, 1  ;;  %p2601_p9 = scmp.ge.s32.totalorder %s3578_s21, 2 }
   0xc   : > { %p3657_p8 = por %p162_p7, %p161_p4  ;;  %184 = sbr.rel (%p2601_p9) target bundleno = 31 (0x1f), region = 24 }
  0x13   : > { %187 = sbr.rel (!%p55_p5) target bundleno = 31 (0x1f), region = 28  ;;  %s189_s30 = sand.u32 (%p55_p5), 1, %s3574_s20  }
  0x14   : > { %s2603_s6 = sshll.u32 (%p55_p5), %s3578_s21, 3  ;;  %s2602_s7 = sshll.u32 (%p55_p5), %s189_s30, 7 }
  0x15   : > { %s3669_s10 = scalar_lea.vmem (%p55_p5), %s4559_s1, %s2603_s6  ;;  %s191_s11 = scalar_lea.vmem (%p55_p5), [#allocation2], %s2602_s7 }
  0x16   : > { %v251_v0 = vld [vmem:[%s3669_s10] sm:$0xff] (%p55_p5)  ;;  %v253_v1 = vld [vmem:[%s3669_s10 + $0x10] sm:$0xff] (%p55_p5) }
  0x17   : > { %v255_v2 = vld [vmem:[%s3669_s10 + $0x20] sm:$0xff] (%p55_p5)  ;;  %252 = vst [vmem:[%s191_s11] sm:$0xff] (%p55_p5), %v251_v0  ;;  %254 = vst [vmem:[%s191_s11 + $0x8] sm:$0xff] (%p55_p5), %v253_v1  ;;  %v257_v3 = vld [vmem:[%s3669_s10 + $0x30] sm:$0xff] (%p55_p5) }
  0x18   : > { %256 = vst [vmem:[%s191_s11 + $0x10] sm:$0xff] (%p55_p5), %v255_v2  ;;  %v259_v4 = vld [vmem:[%s3669_s10 + $0x40] sm:$0xff] (%p55_p5)  ;;  %v261_v5 = vld [vmem:[%s3669_s10 + $0x50] sm:$0xff] (%p55_p5)  ;;  %258 = vst [vmem:[%s191_s11 + $0x18] sm:$0xff] (%p55_p5), %v257_v3 }
  0x19   : > { %260 = vst [vmem:[%s191_s11 + $0x20] sm:$0xff] (%p55_p5), %v259_v4  ;;  %262 = vst [vmem:[%s191_s11 + $0x28] sm:$0xff] (%p55_p5), %v261_v5  ;;  %v263_v6 = vld [vmem:[%s3669_s10 + $0x60] sm:$0xff] (%p55_p5)  ;;  %v265_v7 = vld [vmem:[%s3669_s10 + $0x70] sm:$0xff] (%p55_p5) }
  0x1a   : > { %v267_v8 = vld [vmem:[%s3669_s10 + $0x80] sm:$0xff]  ;;  %264 = vst [vmem:[%s191_s11 + $0x30] sm:$0xff] %v263_v6  ;;  %266 = vst [vmem:[%s191_s11 + $0x38] sm:$0xff] %v265_v7  ;;  %v269_v9 = vld [vmem:[%s3669_s10 + $0x90] sm:$0xff] }
  0x1b   : > { %268 = vst [vmem:[%s191_s11 + $0x40] sm:$0xff] %v267_v8  ;;  %v271_v10 = vld [vmem:[%s3669_s10 + $0xa0] sm:$0xff]  ;;  %v273_v11 = vld [vmem:[%s3669_s10 + $0xb0] sm:$0xff]  ;;  %270 = vst [vmem:[%s191_s11 + $0x48] sm:$0xff] %v269_v9 }
  0x1c   : > { %272 = vst [vmem:[%s191_s11 + $0x50] sm:$0xff] %v271_v10  ;;  %274 = vst [vmem:[%s191_s11 + $0x58] sm:$0xff] %v273_v11  ;;  %v275_v12 = vld [vmem:[%s3669_s10 + $0xc0] sm:$0xff]  ;;  %v277_v13 = vld [vmem:[%s3669_s10 + $0xd0] sm:$0xff] }
  0x1d   : > { %v279_v14 = vld [vmem:[%s3669_s10 + $0xe0] sm:$0xff]  ;;  %276 = vst [vmem:[%s191_s11 + $0x60] sm:$0xff] %v275_v12  ;;  %278 = vst [vmem:[%s191_s11 + $0x68] sm:$0xff] %v277_v13  ;;  %v281_v15 = vld [vmem:[%s3669_s10 + $0xf0] sm:$0xff] }
  0x1e   : > { %280 = vst [vmem:[%s191_s11 + $0x70] sm:$0xff] %v279_v14  ;;  %282 = vst [vmem:[%s191_s11 + $0x78] sm:$0xff] %v281_v15 }
  0x1f PF: > { %p2604_p10 = scmp.ge.s32.totalorder %s3578_s21, 1  ;;  %p300_p11 = scmp.lt.s32.totalorder %s3578_s21, 3 }
  0x21   : > { %p301_p12 = pnand %p2604_p10, %p300_p11 }
  0x22   : > { %p341_p13 = scmp.lt.s32.totalorder (!%p301_p12), %s3635_s22, 1  ;;  %v348_v16 = vld [vmem:[%s4560_s2] sm:$0xff] (!%p301_p12)  ;;  %vm365_vm0 = vcmask (!%p301_p12), 64512   ;;  %v349_v17 = vld [vmem:[%s4560_s2 + $0x8] sm:$0xff] (!%p301_p12)  ;;  %v350_v18 = vld [vmem:[%s4560_s2 + $0x10] sm:$0xff] (!%p301_p12)  ;;  %vm3581_vm1 = vmmov (!%p301_p12), 0  }
  0x23   : > { %304 = sbr.rel (%p301_p12) target bundleno = 921 (0x399), region = 74  ;;  %v367_v19 = vsel (!%p301_p12), %vm365_vm0, %v348_v16, 0  ;;  %v370_v20 = vsel (!%p301_p12), %vm365_vm0, %v349_v17, 0  ;;  %v373_v21 = vsel (!%p301_p12), %vm365_vm0, %v350_v18, 0  ;;  %v351_v22 = vld [vmem:[%s4560_s2 + $0x18] sm:$0xff] (!%p301_p12)  ;;  %v352_v23 = vld [vmem:[%s4560_s2 + $0x20] sm:$0xff] (!%p301_p12) }
  0x24   : > { %v353_v24 = vld [vmem:[%s4560_s2 + $0x28] sm:$0xff] (!%p301_p12)  ;;  %v3714_v25 = vand.u32 (!%p301_p12), 4294901760, %v367_v19  ;;  %v3716_v26 = vand.u32 (!%p301_p12), 4294901760, %v370_v20  ;;  %v3718_v27 = vand.u32 (!%p301_p12), 4294901760, %v373_v21  ;;  %v376_v28 = vsel (!%p301_p12), %vm365_vm0, %v351_v22, 0  ;;  %v354_v29 = vld [vmem:[%s4560_s2 + $0x30] sm:$0xff] (!%p301_p12) }
  0x25   : > { %v3724_v30 = vand.u32 (!%p301_p12), 4294901760, %v376_v28  ;;  %v379_v31 = vsel (!%p301_p12), %vm365_vm0, %v352_v23, 0  ;;  %v382_v32 = vsel (!%p301_p12), %vm365_vm0, %v353_v24, 0  ;;  %v385_v33 = vsel (!%p301_p12), %vm365_vm0, %v354_v29, 0  ;;  %v355_v34 = vld [vmem:[%s4560_s2 + $0x38] sm:$0xff] (!%p301_p12)  ;;  %v356_v60 = vld [vmem:[%s4560_s2 + $0x40] sm:$0xff] (!%p301_p12) }
  0x26   : > { %v3734_v35 = vsub.f32 (!%p301_p12), %v367_v19, %v3714_v25  ;;  %v3737_v36 = vsub.f32 (!%p301_p12), %v370_v20, %v3716_v26  ;;  %v3740_v37 = vsub.f32 (!%p301_p12), %v373_v21, %v3718_v27  ;;  %v3742_v38 = vand.u32 (!%p301_p12), 4294901760, %v379_v31  ;;  %v357_v61 = vld [vmem:[%s4560_s2 + $0x48] sm:$0xff] (!%p301_p12)  ;;  %v358_v6 = vld [vmem:[%s4560_s2 + $0x50] sm:$0xff] (!%p301_p12)  ;;  %v359_v7 = vld [vmem:[%s4560_s2 + $0x58] sm:$0xff] (!%p301_p12)  ;;  %s4025_s23 = sand.u32 (!%p301_p12), 1, %s3570_s19   ;;  %s2610_s12 = sshll.u32 (!%p301_p12), %s3635_s22, 7 }
  0x27   : > { %v3748_v39 = vsub.f32 (!%p301_p12), %v376_v28, %v3724_v30  ;;  %v3750_v40 = vand.u32 (!%p301_p12), 4294901760, %v382_v32  ;;  %v3752_v41 = vand.u32 (!%p301_p12), 4294901760, %v385_v33  ;;  %v388_v42 = vsel (!%p301_p12), %vm365_vm0, %v355_v34, 0  ;;  %v360_v16 = vld [vmem:[%s4560_s2 + $0x60] sm:$0xff] (!%p301_p12)  ;;  %v361_v17 = vld [vmem:[%s4560_s2 + $0x68] sm:$0xff] (!%p301_p12)  ;;  %v362_v29 = vld [vmem:[%s4560_s2 + $0x70] sm:$0xff] (!%p301_p12)  ;;  %s4514_s17 = scalar_lea.hbm (!%p301_p12), %s4563_s5, %s2610_s12 }
  0x28   : > { %v482_v44 = vand.u32 (!%p301_p12), 4294901760, %v3734_v35  ;;  %v492_v45 = vand.u32 (!%p301_p12), 4294901760, %v3737_v36  ;;  %v502_v46 = vand.u32 (!%p301_p12), 4294901760, %v3740_v37  ;;  %v3759_v47 = vsub.f32 (!%p301_p12), %v379_v31, %v3742_v38  ;;  %s2605_s25 = sshll.u32 (!%p301_p12), %s4025_s23, 7  ;;  %s2606_s7 = sshll.u32 (!%p301_p12), %s4025_s23, 3 }
  0x29   : > { %v512_v49 = vand.u32 (!%p301_p12), 4294901760, %v3748_v39  ;;  %v3765_v50 = vsub.f32 (!%p301_p12), %v382_v32, %v3750_v40  ;;  %v3768_v51 = vsub.f32 (!%p301_p12), %v385_v33, %v3752_v41  ;;  %v3814_v9 = vand.u32 (!%p301_p12), 4294901760, %v388_v42  ;;  %s4033_s6 = scalar_lea.vmem (!%p301_p12), [#allocation2], %s2605_s25  ;;  %s2500_s25 = scalar_lea.sflag (!%p301_p12), [#allocation4], %s4025_s23 }
  0x2a   : > { %s3712_s8 = scalar_select %p341_p13, %s3635_s22, 1  ;;  %v483_v52 = vsub.f32 %v3734_v35, %v482_v44  ;;  %v493_v53 = vsub.f32 %v3737_v36, %v492_v45  ;;  %v503_v54 = vsub.f32 %v3740_v37, %v502_v46  ;;  %v522_v55 = vand.u32 4294901760, %v3759_v47 }
  0x2b   : > { %v513_v56 = vsub.f32 %v3748_v39, %v512_v49  ;;  %v532_v58 = vand.u32 4294901760, %v3765_v50  ;;  %v542_v59 = vand.u32 4294901760, %v3768_v51  ;;  %v391_v10 = vsel %vm365_vm0, %v356_v60, 0  ;;  %s3583_s22 = smov [#allocation3]  }
  0x2c   : > { %s2607_s13 = sshll.u32 %s3712_s8, 3  ;;  %v484_v62 = vand.u32 4294901760, %v483_v52  ;;  %v494_v63 = vand.u32 4294901760, %v493_v53  ;;  %v504_v0 = vand.u32 4294901760, %v503_v54  ;;  %v523_v1 = vsub.f32 %v3759_v47, %v522_v55  ;;  %s347_s11 = scalar_lea.vmem %s4562_s4, %s3712_s8 }
  0x2d   : > { %s344_s16 = scalar_lea.vmem %s4561_s3, %s2607_s13  ;;  %v514_v2 = vand.u32 4294901760, %v513_v56  ;;  %v533_v4 = vsub.f32 %v3765_v50, %v532_v58  ;;  %v543_v5 = vsub.f32 %v3768_v51, %v542_v59  ;;  %v394_v11 = vsel %vm365_vm0, %v357_v61, 0  ;;  %s340_s13 = scalar_lea.vmem [#allocation3], %s2606_s7 }
  0x2e   : > { %v364_v43 = vld [vmem:[%s344_s16] sm:$0xff]  ;;  %2819 = vmatprep.mubr.f32.mxu0 %v484_v62  ;;  %v524_v8 = vand.u32 4294901760, %v523_v1  ;;  %v3820_v15 = vand.u32 4294901760, %v391_v10  ;;  %v3829_v18 = vsub.f32 %v388_v42, %v3814_v9  ;;  %v3831_v19 = vand.u32 4294901760, %v394_v11  ;;  %v363_v1 = vld [vmem:[%s4560_s2 + $0x78] sm:$0xff]  ;;  %s2513_s14 = sshll.u32 %s340_s13, 4  ;;  %s4516_s14 = int_to_ptr.vmem [resolvable:$true] %s2513_s14 }
  0x2f   : > { %v3761_v48 = vand.u32 4294901760, %v364_v43  ;;  %v534_v13 = vand.u32 4294901760, %v533_v4  ;;  %v544_v14 = vand.u32 4294901760, %v543_v5  ;;  %v397_v20 = vsel %vm365_vm0, %v358_v6, 0  ;;  %s3516_s8 = scalar_lea.vmem %s4516_s14, 128  ;;  %s3520_s26 = sshll.u32 %s3583_s22, 4  ;;  %s3521_s26 = int_to_ptr.vmem [resolvable:$false] %s3520_s26 }
  0x30   : > { %v400_v21 = vsel %vm365_vm0, %v359_v7, 0  ;;  %v3836_v23 = vsub.f32 %v391_v10, %v3820_v15  ;;  %v3838_v24 = vand.u32 4294901760, %v397_v20  ;;  %v552_v31 = vand.u32 4294901760, %v3829_v18  ;;  %p3517_p0 = scmp.ne.s32.totalorder %s4516_s14, %s3516_s8  ;;  %s3522_s30 = scalar_lea.vmem %s3521_s26, 256 }
  0x31   : > { %2817 = vmatprep.subr.mxu0 %v3761_v48  ;;  %v3785_v57 = vsub.f32 %v364_v43, %v3761_v48  ;;  %v3840_v28 = vand.u32 4294901760, %v400_v21  ;;  %v3847_v32 = vsub.f32 %v394_v11, %v3831_v19  ;;  %v403_v33 = vsel %vm365_vm0, %v360_v16, 0  ;;  %p3523_p3 = scmp.lt.s32.totalorder %s4516_s14, %s3521_s26  ;;  %p3524_p4 = scmp.lt.s32.totalorder %s3522_s30, %s3516_s8 }
  0x32   : > { %2818 = vmatpush3.msra.mxu0 %v3761_v48  ;;  %v406_v34 = vsel %vm365_vm0, %v361_v17, 0  ;;  %v562_v42 = vand.u32 4294901760, %v3836_v23  ;;  %v3853_v43 = vsub.f32 %v397_v20, %v3838_v24  ;;  %v3858_v53 = vand.u32 4294901760, %v403_v33  ;;  %p3518_p1 = pnand %p3517_p0, %p3653_p6 }
  0x33   : > { %v3800_v3 = vand.u32 4294901760, %v3785_v57  ;;  %2820 = vmatmul.mubr.f32.vlgmr.msra.gmra.mrb[0].mxu0 %v494_v63  ;;  %v3856_v52 = vsub.f32 %v400_v21, %v3840_v28  ;;  %v553_v54 = vsub.f32 %v3829_v18, %v552_v31  ;;  %v572_v56 = vand.u32 4294901760, %v3847_v32  ;;  %p3525_p5 = por %p3524_p4, %p3523_p3 }
  0x34   : > { %2822 = vmatprep.mubr.f32.mxu0 %v504_v0  ;;  %v3864_v60 = vand.u32 4294901760, %v406_v34  ;;  %v409_v61 = vsel %vm365_vm0, %v362_v29, 0  ;;  %v563_v62 = vsub.f32 %v3836_v23, %v562_v42  ;;  %v582_v63 = vand.u32 4294901760, %v3853_v43  ;;  %p3519_p2 = pneg %p3518_p1 }
  0x35   : > { %v644_v12 = vsub.f32 %v3785_v57, %v3800_v3  ;;  %v3872_v0 = vsub.f32 %v403_v33, %v3858_v53  ;;  %v3879_v4 = vand.u32 4294901760, %v409_v61  ;;  %v554_v5 = vand.u32 4294901760, %v553_v54 }
  0x36   : > { %v564_v6 = vand.u32 4294901760, %v563_v62  ;;  %v573_v7 = vsub.f32 %v3847_v32, %v572_v56  ;;  %v583_v10 = vsub.f32 %v3853_v43, %v582_v63  ;;  %p3526_p7 = pnand %p3525_p5, %p3519_p2 }
  0x37   : > { %v645_v22 = vand.u32 4294901760, %v644_v12  ;;  %2823 = vmatmul.mubr.f32.gmra.mrb[2].mxu0 %v514_v2  ;;  %v592_v2 = vand.u32 4294901760, %v3856_v52  ;;  %v602_v11 = vand.u32 4294901760, %v3872_v0  ;;  %v3892_v12 = vsub.f32 %v409_v61, %v3879_v4 }
  0x38   : > { %2825 = vmatprep.mubr.f32.mxu0 %v524_v8  ;;  %v3885_v8 = vsub.f32 %v406_v34, %v3864_v60  ;;  %v574_v17 = vand.u32 4294901760, %v573_v7 }
  0x39   : > { %2843 = vmatprep.subr.mxu0 %v645_v22  ;;  %v593_v20 = vsub.f32 %v3856_v52, %v592_v2  ;;  %v603_v29 = vsub.f32 %v3872_v0, %v602_v11  ;;  %v622_v33 = vand.u32 4294901760, %v3892_v12 }
  0x3a   : > { %2844 = vmatpush3.msra.mxu0 %v645_v22  ;;  %v584_v22 = vand.u32 4294901760, %v583_v10 }
  0x3b   : > { %2869 = vmatprep.subr.mxu0 %v3785_v57  ;;  %2826 = vmatmul.mubr.f32.gmra.mrb[4].mxu0 %v534_v13  ;;  %v412_v13 = vsel %vm365_vm0, %v363_v1, 0  ;;  %v594_v34 = vand.u32 4294901760, %v593_v20  ;;  %v604_v62 = vand.u32 4294901760, %v603_v29  ;;  %v623_v1 = vsub.f32 %v3892_v12, %v622_v33 }
  0x3c   : > { %2828 = vmatprep.mubr.f32.mxu0 %v544_v14  ;;  %v3895_v16 = vand.u32 4294901760, %v412_v13  ;;  %v612_v14 = vand.u32 4294901760, %v3885_v8 }
  0x3d   : > { %v624_v7 = vand.u32 4294901760, %v623_v1 }
  0x3e   : > { %v3902_v21 = vsub.f32 %v412_v13, %v3895_v16  ;;  %v613_v54 = vsub.f32 %v3885_v8, %v612_v14 }
  0x3f   : > { %2829 = vmatmul.mubr.f32.gmra.mrb[6].mxu0 %v554_v5 }
  0x40   : > { %2831 = vmatprep.mubr.f32.mxu0 %v564_v6  ;;  %v632_v61 = vand.u32 4294901760, %v3902_v21  ;;  %v614_v5 = vand.u32 4294901760, %v613_v54 }
  0x42   : > { %v633_v6 = vsub.f32 %v3902_v21, %v632_v61 }
  0x43   : > { %2832 = vmatmul.mubr.f32.gmra.mrb[8].mxu0 %v574_v17 }
  0x44   : > { %2834 = vmatprep.mubr.f32.mxu0 %v584_v22  ;;  %v634_v10 = vand.u32 4294901760, %v633_v6  ;;  %v1511_v22 = vld [vmem:[%s4033_s6 + $0x30] sm:$0xff] }
  0x47   : > { %2835 = vmatmul.mubr.f32.gmra.mrb[10].mxu0 %v594_v34 }
  0x48   : > { %2837 = vmatprep.mubr.f32.mxu0 %v604_v62 }
  0x4b   : > { %2838 = vmatmul.mubr.f32.gmra.mrb[12].mxu0 %v614_v5 }
  0x4c   : > { %2840 = vmatprep.mubr.f32.mxu0 %v624_v7 }
  0x4f   : > { %2841 = vmatmul.mubr.f32.gmra.mrb[14].mxu0 %v634_v10 }
  0x50   : > { %2845 = vmatprep.mubr.f32.mxu0 %v3714_v25 }
  0x53   : > { %2846 = vmatmul.mubr.f32.vlgmr.msra.gmra.mrb[0].mxu0 %v3716_v26 }
  0x54   : > { %2848 = vmatprep.mubr.f32.mxu0 %v3718_v27  ;;  %2870 = vmatpush3.msra.mxu0 %v3785_v57 }
  0x55   : > { %2895 = vmatprep.subr.mxu0 %v3761_v48 }
  0x57   : > { %2849 = vmatmul.mubr.f32.gmra.mrb[2].mxu0 %v3724_v30 }
  0x58   : > { %2851 = vmatprep.mubr.f32.mxu0 %v3742_v38 }
  0x5b   : > { %2852 = vmatmul.mubr.f32.gmra.mrb[4].mxu0 %v3750_v40 }
  0x5c   : > { %2854 = vmatprep.mubr.f32.mxu0 %v3752_v41 }
  0x5f   : > { %2855 = vmatmul.mubr.f32.gmra.mrb[6].mxu0 %v3814_v9 }
  0x60   : > { %2857 = vmatprep.mubr.f32.mxu0 %v3820_v15 }
  0x63   : > { %2858 = vmatmul.mubr.f32.gmra.mrb[8].mxu0 %v3831_v19 }
  0x64   : > { %2860 = vmatprep.mubr.f32.mxu0 %v3838_v24 }
  0x67   : > { %2861 = vmatmul.mubr.f32.gmra.mrb[10].mxu0 %v3840_v28 }
  0x68   : > { %2863 = vmatprep.mubr.f32.mxu0 %v3858_v53 }
  0x6b   : > { %2864 = vmatmul.mubr.f32.gmra.mrb[12].mxu0 %v3864_v60 }
  0x6c   : > { %2866 = vmatprep.mubr.f32.mxu0 %v3879_v4 }
  0x6f   : > { %2867 = vmatmul.mubr.f32.gmra.mrb[14].mxu0 %v3895_v16 }
  0x70   : > { %2871 = vmatprep.mubr.f32.mxu0 %v3734_v35 }
  0x73   : > { %2872 = vmatmul.mubr.f32.vlgmr.msra.gmra.mrb[0].mxu0 %v3737_v36  ;;  %v1506_v36 = vld [vmem:[%s4033_s6 + $0x8] sm:$0xff] }
  0x74   : > { %2874 = vmatprep.mubr.f32.mxu0 %v3740_v37  ;;  %2896 = vmatpush3.msra.mxu0 %v3761_v48 }
  0x75   : > { %2921 = vmatprep.subr.mxu0 %v3800_v3 }
  0x77   : > { %2875 = vmatmul.mubr.f32.gmra.mrb[2].mxu0 %v3748_v39  ;;  %v1505_v39 = vld [vmem:[%s4033_s6] sm:$0xff] }
  0x78   : > { %2877 = vmatprep.mubr.f32.mxu0 %v3759_v47  ;;  %v1508_v47 = vld [vmem:[%s4033_s6 + $0x18] sm:$0xff] }
  0x7b   : > { %2878 = vmatmul.mubr.f32.gmra.mrb[4].mxu0 %v3765_v50  ;;  %v1507_v50 = vld [vmem:[%s4033_s6 + $0x10] sm:$0xff] }
  0x7c   : > { %2880 = vmatprep.mubr.f32.mxu0 %v3768_v51 }
  0x7f   : > { %2881 = vmatmul.mubr.f32.gmra.mrb[6].mxu0 %v3829_v18 }
  0x80   : > { %2883 = vmatprep.mubr.f32.mxu0 %v3836_v23 }
  0x83   : > { %2884 = vmatmul.mubr.f32.gmra.mrb[8].mxu0 %v3847_v32 }
  0x84   : > { %2886 = vmatprep.mubr.f32.mxu0 %v3853_v43 }
  0x87   : > { %2887 = vmatmul.mubr.f32.gmra.mrb[10].mxu0 %v3856_v52  ;;  %v1509_v52 = vld [vmem:[%s4033_s6 + $0x20] sm:$0xff] }
  0x88   : > { %2889 = vmatprep.mubr.f32.mxu0 %v3872_v0 }
  0x8b   : > { %2890 = vmatmul.mubr.f32.gmra.mrb[12].mxu0 %v3885_v8  ;;  %v1512_v8 = vld [vmem:[%s4033_s6 + $0x38] sm:$0xff] }
  0x8c   : > { %2892 = vmatprep.mubr.f32.mxu0 %v3892_v12 }
  0x8f   : > { %2893 = vmatmul.mubr.f32.gmra.mrb[14].mxu0 %v3902_v21 }
  0x90   : > { %2897 = vmatprep.mubr.f32.mxu0 %v482_v44 }
  0x93   : > { %2898 = vmatmul.mubr.f32.vlgmr.msra.gmra.mrb[0].mxu0 %v492_v45 }
  0x94   : > { %2900 = vmatprep.mubr.f32.mxu0 %v502_v46  ;;  %2922 = vmatpush3.msra.mxu0 %v3800_v3 }
  0x95   : > { %2947 = vmatprep.subr.mxu0 %v3761_v48 }
  0x97   : > { %2901 = vmatmul.mubr.f32.gmra.mrb[2].mxu0 %v512_v49 }
  0x98   : > { %2903 = vmatprep.mubr.f32.mxu0 %v522_v55 }
  0x9b   : > { %2904 = vmatmul.mubr.f32.gmra.mrb[4].mxu0 %v532_v58 }
  0x9c   : > { %2906 = vmatprep.mubr.f32.mxu0 %v542_v59 }
  0x9f   : > { %2907 = vmatmul.mubr.f32.gmra.mrb[6].mxu0 %v552_v31 }
  0xa0   : > { %2909 = vmatprep.mubr.f32.mxu0 %v562_v42 }
  0xa3   : > { %2910 = vmatmul.mubr.f32.gmra.mrb[8].mxu0 %v572_v56 }
  0xa4   : > { %2912 = vmatprep.mubr.f32.mxu0 %v582_v63 }
  0xa7   : > { %2913 = vmatmul.mubr.f32.gmra.mrb[10].mxu0 %v592_v2 }
  0xa8   : > { %2915 = vmatprep.mubr.f32.mxu0 %v602_v11 }
  0xab   : > { %2916 = vmatmul.mubr.f32.gmra.mrb[12].mxu0 %v612_v14 }
  0xac   : > { %2918 = vmatprep.mubr.f32.mxu0 %v622_v33 }
  0xaf   : > { %2919 = vmatmul.mubr.f32.gmra.mrb[14].mxu0 %v632_v61 }
  0xb0   : > { %2923 = vmatprep.mubr.f32.mxu0 %v3714_v25 }
  0xb3   : > { %2924 = vmatmul.mubr.f32.vlgmr.msra.gmra.mrb[0].mxu0 %v3716_v26 }
  0xb4   : > { %2926 = vmatprep.mubr.f32.mxu0 %v3718_v27  ;;  %2948 = vmatpush3.msra.mxu0 %v3761_v48 }
  0xb7   : > { %2927 = vmatmul.mubr.f32.gmra.mrb[2].mxu0 %v3724_v30 }
  0xb8   : > { %2929 = vmatprep.mubr.f32.mxu0 %v3742_v38 }
  0xbb   : > { %2930 = vmatmul.mubr.f32.gmra.mrb[4].mxu0 %v3750_v40 }
  0xbc   : > { %2932 = vmatprep.mubr.f32.mxu0 %v3752_v41 }
  0xbf   : > { %2933 = vmatmul.mubr.f32.gmra.mrb[6].mxu0 %v3814_v9 }
  0xc0   : > { %2935 = vmatprep.mubr.f32.mxu0 %v3820_v15 }
  0xc3   : > { %2936 = vmatmul.mubr.f32.gmra.mrb[8].mxu0 %v3831_v19 }
  0xc4   : > { %2938 = vmatprep.mubr.f32.mxu0 %v3838_v24 }
  0xc7   : > { %2939 = vmatmul.mubr.f32.gmra.mrb[10].mxu0 %v3840_v28 }
  0xc8   : > { %2941 = vmatprep.mubr.f32.mxu0 %v3858_v53 }
  0xcb   : > { %2942 = vmatmul.mubr.f32.gmra.mrb[12].mxu0 %v3864_v60 }
  0xcc   : > { %2944 = vmatprep.mubr.f32.mxu0 %v3879_v4 }
  0xcf   : > { %2945 = vmatmul.mubr.f32.gmra.mrb[14].mxu0 %v3895_v16 }
  0xd0   : > { %2949 = vmatprep.mubr.f32.mxu0 %v3714_v25  ;;  %v3580_v25 = vmov 0.0|0.0  }
  0xd1   : > { %3183 = vmatprep.subr.bf16.mxu1 %v3580_v25 }
  0xd3   : > { %2950 = vmatmul.mubr.f32.vlgmr.msra.gmra.mrb[0].mxu0 %v3716_v26  ;;  %v3582_v26 = vmov 0.0  }
  0xd4   : > { %2952 = vmatprep.mubr.f32.mxu0 %v3718_v27  ;;  %3005 = vmatprep.mubr.msk.f32.mxu1 %vm3581_vm1, %v3582_v26  ;;  %v1849_v27 = vld [vmem:[%s4558_s0] sm:$0xff] }
  0xd7   : > { %2953 = vmatmul.mubr.f32.gmra.mrb[2].mxu0 %v3724_v30  ;;  %v4031_v30 = vand.u32 4294901760, %v1849_v27 }
  0xd8   : > { %2955 = vmatprep.mubr.f32.mxu0 %v3742_v38 }
  0xdb   : > { %2956 = vmatmul.mubr.f32.gmra.mrb[4].mxu0 %v3750_v40  ;;  %v4038_v40 = vsub.f32 %v1849_v27, %v4031_v30 }
  0xdc   : > { %2958 = vmatprep.mubr.f32.mxu0 %v3752_v41 }
  0xdd   : > { %v4564_v51 = vand.u32 4294901760, %v4038_v40 }
  0xdf   : > { %2959 = vmatmul.mubr.f32.gmra.mrb[6].mxu0 %v3814_v9 }
  0xe0   : > { %2961 = vmatprep.mubr.f32.mxu0 %v3820_v15 }
  0xe3   : > { %2962 = vmatmul.mubr.f32.gmra.mrb[8].mxu0 %v3831_v19  ;;  %v1510_v19 = vld [vmem:[%s4033_s6 + $0x28] sm:$0xff] }
  0xe4   : > { %2964 = vmatprep.mubr.f32.mxu0 %v3838_v24 }
  0xe7   : > { %2965 = vmatmul.mubr.f32.gmra.mrb[10].mxu0 %v3840_v28  ;;  %v4059_v28 = vsub.f32 %v4038_v40, %v4564_v51 }
  0xe8   : > { %2967 = vmatprep.mubr.f32.mxu0 %v3858_v53 }
  0xeb   : > { %2968 = vmatmul.mubr.f32.gmra.mrb[12].mxu0 %v3864_v60 }
  0xec   : > { %2970 = vmatprep.mubr.f32.mxu0 %v3879_v4 }
  0xef   : > { %2971 = vmatmul.mubr.f32.gmra.mrb[14].mxu0 %v3895_v16  ;;  %v1942_v16 = vand.u32 4294901760, %v4059_v28 }
 0x1a6   : > { %v2951_v35 = vpop.f32.mrb[0].mxu0 }
 0x1a7   : > { %v1522_v37 = vmul.f32 2.0, %v2951_v35  ;;  %v1411_v38 = vpop.f32.mrb[1].mxu0 }
 0x1a8   : > { %v1521_v41 = vmul.f32 2.0, %v1411_v38 }
 0x1a9   : > { %v4040_v44 = vadd.f32 %v1522_v37, %v1506_v36 }
 0x1aa   : > { %v4042_v45 = vadd.f32 %v1521_v41, %v1505_v39  ;;  %v2954_v46 = vpop.f32.mrb[2].mxu0 }
 0x1ab   : > { %v1524_v48 = vmul.f32 2.0, %v2954_v46  ;;  %v1423_v49 = vpop.f32.mrb[3].mxu0 }
 0x1ac   : > { %v1553_v55 = vmin.f32 %v4042_v45, %v4040_v44  ;;  %v1609_v57 = vmax.f32 %v4042_v45, %v4040_v44  ;;  %v1523_v58 = vmul.f32 2.0, %v1423_v49 }
 0x1ad   : > { %v4051_v59 = vadd.f32 %v1524_v48, %v1508_v47 }
 0x1ae   : > { %v1554_v3 = vrot.slane %v1553_v55, 4  ;;  %v1610_v9 = vrot.slane %v1609_v57, 4  ;;  %v4053_v15 = vadd.f32 %v1523_v58, %v1507_v50  ;;  %v2957_v18 = vpop.f32.mrb[4].mxu0  ;;  %v1514_v50 = vld [vmem:[%s4033_s6 + $0x48] sm:$0xff] }
 0x1af   : > { %v1526_v23 = vmul.f32 2.0, %v2957_v18  ;;  %v1435_v24 = vpop.f32.mrb[5].mxu0 }
 0x1b0   : > { %v1555_v31 = vmin.f32 %v1553_v55, %v1554_v3  ;;  %v1611_v32 = vmax.f32 %v1609_v57, %v1610_v9  ;;  %v1560_v42 = vmin.f32 %v4053_v15, %v4051_v59  ;;  %v1616_v43 = vmax.f32 %v4053_v15, %v4051_v59 }
 0x1b1   : > { %v4066_v53 = vadd.f32 %v1526_v23, %v1510_v19  ;;  %v1525_v56 = vmul.f32 2.0, %v1435_v24 }
 0x1b2   : > { %v1556_v60 = vrot.slane %v1555_v31, 2  ;;  %v1612_v63 = vrot.slane %v1611_v32, 2  ;;  %v1561_v0 = vrot.slane %v1560_v42, 4  ;;  %v1617_v2 = vrot.slane %v1616_v43, 4  ;;  %v2960_v4 = vpop.f32.mrb[6].mxu0 }
 0x1b3   : > { %v4069_v11 = vadd.f32 %v1525_v56, %v1509_v52  ;;  %v1528_v12 = vmul.f32 2.0, %v2960_v4  ;;  %v1447_v13 = vpop.f32.mrb[7].mxu0 }
 0x1b4   : > { %v1557_v17 = vmin.f32 %v1555_v31, %v1556_v60  ;;  %v1613_v20 = vmax.f32 %v1611_v32, %v1612_v63  ;;  %v1562_v14 = vmin.f32 %v1560_v42, %v1561_v0  ;;  %v1618_v21 = vmax.f32 %v1616_v43, %v1617_v2  ;;  %v1513_v0 = vld [vmem:[%s4033_s6 + $0x40] sm:$0xff]  ;;  %v1516_v2 = vld [vmem:[%s4033_s6 + $0x58] sm:$0xff] }
 0x1b5   : > { %v1567_v29 = vmin.f32 %v4069_v11, %v4066_v53  ;;  %v1623_v33 = vmax.f32 %v4069_v11, %v4066_v53  ;;  %v4077_v34 = vadd.f32 %v1528_v12, %v1512_v8  ;;  %v1527_v54 = vmul.f32 2.0, %v1447_v13 }
 0x1b6   : > { %v1558_v61 = vrot.slane %v1557_v17, 1  ;;  %v1614_v62 = vrot.slane %v1613_v20, 1  ;;  %v1563_v1 = vrot.slane %v1562_v14, 2  ;;  %v1619_v5 = vrot.slane %v1618_v21, 2  ;;  %v2963_v6 = vpop.f32.mrb[8].mxu0 }
 0x1b7   : > { %v1568_v7 = vrot.slane %v1567_v29, 4  ;;  %v1624_v10 = vrot.slane %v1623_v33, 4  ;;  %v4079_v27 = vadd.f32 %v1527_v54, %v1511_v22  ;;  %v1530_v35 = vmul.f32 2.0, %v2963_v6  ;;  %v1459_v36 = vpop.f32.mrb[9].mxu0 }
 0x1b8   : > { %v4081_v37 = vmin.f32 %v1557_v17, %v1558_v61  ;;  %v1615_v38 = vmax.f32 %v1613_v20, %v1614_v62  ;;  %v1564_v39 = vmin.f32 %v1562_v14, %v1563_v1  ;;  %v1620_v41 = vmax.f32 %v1618_v21, %v1619_v5 }
 0x1b9   : > { %v1569_v46 = vmin.f32 %v1567_v29, %v1568_v7  ;;  %v1625_v47 = vmax.f32 %v1623_v33, %v1624_v10  ;;  %v1574_v48 = vmin.f32 %v4079_v27, %v4077_v34  ;;  %v1630_v49 = vmax.f32 %v4079_v27, %v4077_v34  ;;  %v1515_v29 = vld [vmem:[%s4033_s6 + $0x50] sm:$0xff] }
 0x1ba   : > { %v1665_v55 = vsub.f32 %v1615_v38, %v4081_v37  ;;  %v1697_v57 = vsub.f32 0.0, %v4081_v37  ;;  %v1565_v58 = vrot.slane %v1564_v39, 1  ;;  %v1621_v3 = vrot.slane %v1620_v41, 1  ;;  %v2966_v9 = vpop.f32.mrb[10].mxu0  ;;  %v1518_v38 = vld [vmem:[%s4033_s6 + $0x68] sm:$0xff] }
 0x1bb   : > { %v1570_v18 = vrot.slane %v1569_v46, 2  ;;  %v1626_v19 = vrot.slane %v1625_v47, 2  ;;  %v1575_v23 = vrot.slane %v1574_v48, 4  ;;  %v1631_v24 = vrot.slane %v1630_v49, 4  ;;  %v1471_v31 = vpop.f32.mrb[11].mxu0 }
 0x1bc   : > { %3484 = vrcp.f32 %v1665_v55  ;;  %v4090_v32 = vmin.f32 %v1564_v39, %v1565_v58  ;;  %v1622_v42 = vmax.f32 %v1620_v41, %v1621_v3  ;;  %v4092_v43 = vadd.f32 %v1530_v35, %v1514_v50 }
 0x1bd   : > { %v1571_v52 = vmin.f32 %v1569_v46, %v1570_v18  ;;  %v1627_v56 = vmax.f32 %v1625_v47, %v1626_v19  ;;  %v1576_v60 = vmin.f32 %v1574_v48, %v1575_v23  ;;  %v1632_v63 = vmax.f32 %v1630_v49, %v1631_v24 }
 0x1be   : > { %v1666_v4 = vsub.f32 %v1622_v42, %v4090_v32  ;;  %v1698_v8 = vsub.f32 0.0, %v4090_v32  ;;  %v1529_v12 = vmul.f32 2.0, %v1459_v36  ;;  %v1532_v13 = vmul.f32 2.0, %v2966_v9  ;;  %v2969_v17 = vpop.f32.mrb[12].mxu0 }
 0x1bf   : > { %v1572_v20 = vrot.slane %v1571_v52, 1  ;;  %v1628_v14 = vrot.slane %v1627_v56, 1  ;;  %v1577_v21 = vrot.slane %v1576_v60, 2  ;;  %v1633_v22 = vrot.slane %v1632_v63, 2  ;;  %v1483_v33 = vpop.f32.mrb[13].mxu0 }
 0x1c0   : > { %3486 = vrcp.f32 %v1666_v4  ;;  %v4099_v54 = vadd.f32 %v1529_v12, %v1513_v0  ;;  %v4101_v61 = vadd.f32 %v1532_v13, %v1516_v2  ;;  %v1531_v62 = vmul.f32 2.0, %v1471_v31 }
 0x1c1   : > { %v4103_v1 = vmin.f32 %v1571_v52, %v1572_v20  ;;  %v1629_v5 = vmax.f32 %v1627_v56, %v1628_v14  ;;  %v1578_v6 = vmin.f32 %v1576_v60, %v1577_v21  ;;  %v1634_v7 = vmax.f32 %v1632_v63, %v1633_v22  ;;  %v1517_v60 = vld [vmem:[%s4033_s6 + $0x60] sm:$0xff] }
 0x1c2   : > { %v1581_v10 = vmin.f32 %v4099_v54, %v4092_v43  ;;  %v1637_v35 = vmax.f32 %v4099_v54, %v4092_v43  ;;  %v4109_v36 = vadd.f32 %v1531_v62, %v1515_v29  ;;  %v1534_v39 = vmul.f32 2.0, %v2969_v17  ;;  %v2972_v41 = vpop.f32.mrb[14].mxu0 }
 0x1c3   : > { %v1667_v46 = vsub.f32 %v1629_v5, %v4103_v1  ;;  %v1699_v47 = vsub.f32 0.0, %v4103_v1  ;;  %v1579_v48 = vrot.slane %v1578_v6, 1  ;;  %v1635_v49 = vrot.slane %v1634_v7, 1  ;;  %v4114_v50 = vpop.f32.mrb[15].mxu0 }
 0x1c4   : > { %v1582_v55 = vrot.slane %v1581_v10, 4  ;;  %v1638_v58 = vrot.slane %v1637_v35, 4  ;;  %v1588_v3 = vmin.f32 %v4109_v36, %v4101_v61  ;;  %v1644_v9 = vmax.f32 %v4109_v36, %v4101_v61 }
 0x1c5   : > { %3488 = vrcp.f32 %v1667_v46  ;;  %v4120_v18 = vmin.f32 %v1578_v6, %v1579_v48  ;;  %v1636_v19 = vmax.f32 %v1634_v7, %v1635_v49  ;;  %v4122_v23 = vadd.f32 %v1534_v39, %v1518_v38 }
 0x1c6   : > { %v3485_v24 = vpop.eup %3484  ;;  %v1583_v31 = vmin.f32 %v1581_v10, %v1582_v55  ;;  %v1639_v42 = vmax.f32 %v1637_v35, %v1638_v58  ;;  %v1589_v52 = vrot.slane %v1588_v3, 4  ;;  %v1645_v56 = vrot.slane %v1644_v9, 4 }
 0x1c7   : > { %v1674_v63 = vmul.f32 15.0, %v3485_v24  ;;  %v1668_v0 = vsub.f32 %v1636_v19, %v4120_v18  ;;  %v1700_v2 = vsub.f32 0.0, %v4120_v18  ;;  %v1533_v4 = vmul.f32 2.0, %v1483_v33 }
 0x1c8   : > { %v1584_v12 = vrot.slane %v1583_v31, 2  ;;  %v1640_v13 = vrot.slane %v1639_v42, 2  ;;  %v1590_v17 = vmin.f32 %v1588_v3, %v1589_v52  ;;  %v1646_v20 = vmax.f32 %v1644_v9, %v1645_v56 }
 0x1c9   : > { %v4127_v14 = vmin.f32 %v1674_v63, 20000.0  ;;  %3490 = vrcp.f32 %v1668_v0  ;;  %v4129_v21 = vadd.f32 %v1533_v4, %v1517_v60  ;;  %v1536_v22 = vmul.f32 2.0, %v2972_v41 }
 0x1ca   : > { %v3487_v29 = vpop.eup %3486  ;;  %v1585_v62 = vmin.f32 %v1583_v31, %v1584_v12  ;;  %v1641_v5 = vmax.f32 %v1639_v42, %v1640_v13  ;;  %v1591_v6 = vrot.slane %v1590_v17, 2  ;;  %v1647_v7 = vrot.slane %v1646_v20, 2 }
 0x1cb   : > { %v1705_v10 = vmul.f32 %v1697_v57, %v4127_v14  ;;  %v1721_v33 = vmul.f32 %v4127_v14, %v4042_v45  ;;  %v1676_v35 = vmul.f32 15.0, %v3487_v29  ;;  %v1595_v38 = vmin.f32 %v4129_v21, %v4122_v23 }
 0x1cc   : > { %v1586_v39 = vrot.slane %v1585_v62, 1  ;;  %v1642_v46 = vrot.slane %v1641_v5, 1  ;;  %v1592_v48 = vmin.f32 %v1590_v17, %v1591_v6  ;;  %v1648_v41 = vmax.f32 %v1646_v20, %v1647_v7  ;;  %v1520_v7 = vld [vmem:[%s4033_s6 + $0x78] sm:$0xff] }
 0x1cd   : > { %v4138_v49 = vround.rtne.f32 %v1705_v10  ;;  %v4140_v55 = vmin.f32 %v1676_v35, 20000.0  ;;  %v1596_v58 = vrot.slane %v1595_v38, 4  ;;  %v1651_v37 = vmax.f32 %v4129_v21, %v4122_v23 }
 0x1ce   : > { %v4144_v57 = vmin.f32 %v1585_v62, %v1586_v39  ;;  %v1643_v3 = vmax.f32 %v1641_v5, %v1642_v46  ;;  %v1593_v45 = vrot.slane %v1592_v48, 1  ;;  %v1649_v9 = vrot.slane %v1648_v41, 1 }
 0x1cf   : > { %v3489_v19 = vpop.eup %3488  ;;  %v1737_v24 = vadd.f32 %v4138_v49, %v1721_v33  ;;  %v1706_v31 = vmul.f32 %v1698_v8, %v4140_v55  ;;  %v1723_v42 = vmul.f32 %v4140_v55, %v4053_v15  ;;  %v1597_v52 = vmin.f32 %v1595_v38, %v1596_v58 }
 0x1d0   : > { %v1678_v56 = vmul.f32 15.0, %v3489_v19  ;;  %v1669_v60 = vsub.f32 %v1643_v3, %v4144_v57  ;;  %v1701_v63 = vsub.f32 0.0, %v4144_v57  ;;  %v4154_v0 = vmin.f32 %v1592_v48, %v1593_v45 }
 0x1d1   : > { %v3426_v4 = vround.rtne.f32 %v1737_v24  ;;  %v4156_v12 = vround.rtne.f32 %v1706_v31  ;;  %v1650_v13 = vmax.f32 %v1648_v41, %v1649_v9  ;;  %v1598_v17 = vrot.slane %v1597_v52, 2  ;;  %v1519_v9 = vld [vmem:[%s4033_s6 + $0x70] sm:$0xff] }
 0x1d2   : > { %v4158_v20 = vmin.f32 %v1678_v56, 20000.0  ;;  %3492 = vrcp.f32 %v1669_v60  ;;  %v1702_v32 = vsub.f32 0.0, %v4154_v0  ;;  %v1652_v15 = vrot.slane %v1651_v37, 4 }
 0x1d3   : > { %v3491_v8 = vpop.eup %3490  ;;  %v1769_v29 = vmax.f32 %v3426_v4, 0.0  ;;  %v1739_v62 = vadd.f32 %v4156_v12, %v1723_v42  ;;  %v1670_v5 = vsub.f32 %v1650_v13, %v4154_v0  ;;  %v1599_v6 = vmin.f32 %v1597_v52, %v1598_v17 }
 0x1d4   : > { %v1707_v10 = vmul.f32 %v1699_v47, %v4158_v20  ;;  %v1725_v33 = vmul.f32 %v4158_v20, %v4069_v11  ;;  %v1680_v35 = vmul.f32 15.0, %v3491_v8  ;;  %v1653_v38 = vmax.f32 %v1651_v37, %v1652_v15 }
 0x1d5   : > { %v1785_v39 = vmin.f32 %v1769_v29, 15.0  ;;  %v3428_v46 = vround.rtne.f32 %v1739_v62  ;;  %3494 = vrcp.f32 %v1670_v5  ;;  %v1600_v48 = vrot.slane %v1599_v6, 1 }
 0x1d6   : > { %v4169_v41 = vround.rtne.f32 %v1707_v10  ;;  %v4171_v58 = vmin.f32 %v1680_v35, 20000.0  ;;  %v1654_v3 = vrot.slane %v1653_v38, 2  ;;  %v4173_v45 = vadd.f32 %v1536_v22, %v1520_v7 }
 0x1d7   : > { %v1771_v19 = vmax.f32 %v3428_v46, 0.0  ;;  %v4176_v1 = vmin.f32 %v1599_v6, %v1600_v48  ;;  %v1535_v47 = vmul.f32 2.0, %v4114_v50  ;;  %v1722_v11 = vmul.f32 %v4127_v14, %v4040_v44 }
 0x1d8   : > { %v1741_v37 = vadd.f32 %v4169_v41, %v1725_v33  ;;  %v1708_v24 = vmul.f32 %v1700_v2, %v4171_v58  ;;  %v1727_v31 = vmul.f32 %v4171_v58, %v4079_v27  ;;  %v1655_v22 = vmax.f32 %v1653_v38, %v1654_v3 }
 0x1d9   : > { %v1787_v42 = vmin.f32 %v1771_v19, 15.0  ;;  %v1703_v52 = vsub.f32 0.0, %v4176_v1  ;;  %v4188_v56 = vadd.f32 %v1535_v47, %v1519_v9  ;;  %v1738_v50 = vadd.f32 %v4138_v49, %v1722_v11 }
 0x1da   : > { %v3430_v60 = vround.rtne.f32 %v1741_v37  ;;  %v4191_v4 = vround.rtne.f32 %v1708_v24  ;;  %v1656_v44 = vrot.slane %v1655_v22, 1  ;;  %v1801_v13 = vsub.f32 %v1785_v39, %v4138_v49 }
 0x1db   : > { %v1602_v18 = vmin.f32 %v4188_v56, %v4173_v45  ;;  %v1658_v27 = vmax.f32 %v4188_v56, %v4173_v45  ;;  %v3427_v2 = vround.rtne.f32 %v1738_v50  ;;  %3496 = vrcp.f32 %v4127_v14 }
 0x1dc   : > { %v3493_v17 = vpop.eup %3492  ;;  %v1773_v15 = vmax.f32 %v3430_v60, 0.0  ;;  %v1743_v8 = vadd.f32 %v4191_v4, %v1727_v31  ;;  %v1657_v29 = vmax.f32 %v1655_v22, %v1656_v44  ;;  %v1724_v62 = vmul.f32 %v4140_v55, %v4051_v59 }
 0x1dd   : > { %v1682_v5 = vmul.f32 15.0, %v3493_v17  ;;  %v1603_v6 = vrot.slane %v1602_v18, 4  ;;  %v1659_v7 = vrot.slane %v1658_v27, 4  ;;  %v1770_v10 = vmax.f32 %v3427_v2, 0.0 }
 0x1de   : > { %v1789_v33 = vmin.f32 %v1773_v15, 15.0  ;;  %v3432_v35 = vround.rtne.f32 %v1743_v8  ;;  %v1671_v38 = vsub.f32 %v1657_v29, %v4176_v1  ;;  %v1740_v39 = vadd.f32 %v4156_v12, %v1724_v62 }
 0x1df   : > { %v3495_v46 = vpop.eup %3494  ;;  %v4204_v14 = vmin.f32 %v1682_v5, 20000.0  ;;  %v1604_v48 = vmin.f32 %v1602_v18, %v1603_v6  ;;  %v1660_v3 = vmax.f32 %v1658_v27, %v1659_v7  ;;  %v1786_v9 = vmin.f32 %v1770_v10, 15.0 }
 0x1e0   : > { %v1775_v19 = vmax.f32 %v3432_v35, 0.0  ;;  %v1684_v47 = vmul.f32 15.0, %v3495_v46  ;;  %3498 = vrcp.f32 %v1671_v38  ;;  %v3429_v59 = vround.rtne.f32 %v1740_v39 }
 0x1e1   : > { %v1709_v11 = vmul.f32 %v1701_v63, %v4204_v14  ;;  %v1729_v37 = vmul.f32 %v4204_v14, %v4099_v54  ;;  %v1605_v24 = vrot.slane %v1604_v48, 2  ;;  %v1661_v31 = vrot.slane %v1660_v3, 2 }
 0x1e2   : > { %v1791_v22 = vmin.f32 %v1775_v19, 15.0  ;;  %v4211_v50 = vmin.f32 %v1684_v47, 20000.0  ;;  %v1802_v60 = vsub.f32 %v1786_v9, %v4138_v49  ;;  %v1772_v44 = vmax.f32 %v3429_v59, 0.0 }
 0x1e3   : > { %v4214_v18 = vround.rtne.f32 %v1709_v11  ;;  %v1606_v27 = vmin.f32 %v1604_v48, %v1605_v24  ;;  %v1662_v2 = vmax.f32 %v1660_v3, %v1661_v31  ;;  %v1803_v17 = vsub.f32 %v1787_v42, %v4156_v12 }
 0x1e4   : > { %v1710_v57 = vmul.f32 %v1702_v32, %v4211_v50  ;;  %v1731_v54 = vmul.f32 %v4211_v50, %v4109_v36  ;;  %v1788_v63 = vmin.f32 %v1772_v44, 15.0  ;;  %3500 = vrcp.f32 %v4140_v55 }
 0x1e5   : > { %v3497_v15 = vpop.eup %3496  ;;  %v1745_v49 = vadd.f32 %v4214_v18, %v1729_v37  ;;  %v1607_v8 = vrot.slane %v1606_v27, 1  ;;  %v1663_v29 = vrot.slane %v1662_v2, 1  ;;  %v1726_v62 = vmul.f32 %v4158_v20, %v4066_v53 }
 0x1e6   : > { %v4226_v5 = vround.rtne.f32 %v1710_v57  ;;  %v1833_v42 = vmul.f32 %v3497_v15, %v1801_v13  ;;  %v1834_v6 = vmul.f32 %v3497_v15, %v1802_v60  ;;  %v1804_v0 = vsub.f32 %v1788_v63, %v4156_v12 }
 0x1e7   : > { %v3434_v32 = vround.rtne.f32 %v1745_v49  ;;  %v4229_v7 = vmin.f32 %v1606_v27, %v1607_v8  ;;  %v1664_v36 = vmax.f32 %v1662_v2, %v1663_v29  ;;  %v1742_v55 = vadd.f32 %v4169_v41, %v1726_v62 }
 0x1e8   : > { %v1747_v10 = vadd.f32 %v4226_v5, %v1731_v54  ;;  %v1858_v35 = vand.u32 4294901760, %v1833_v42  ;;  %v1861_v38 = vand.u32 4294901760, %v1834_v6  ;;  %v4234_v39 = vsub.f32 %v1789_v33, %v4169_v41 }
 0x1e9   : > { %v1777_v53 = vmax.f32 %v3434_v32, 0.0  ;;  %v1672_v46 = vsub.f32 %v1664_v36, %v4229_v7  ;;  %v1704_v13 = vsub.f32 0.0, %v4229_v7  ;;  %v3431_v48 = vround.rtne.f32 %v1742_v55 }
 0x1ea   : > { %v3499_v12 = vpop.eup %3498  ;;  %v3436_v3 = vround.rtne.f32 %v1747_v10  ;;  %v4238_v9 = vpack.c.bf16 %v1861_v38, %v1858_v35  ;;  %v4240_v19 = vsub.f32 %v1833_v42, %v1858_v35  ;;  %v4242_v47 = vsub.f32 %v1834_v6, %v1861_v38 }
 0x1eb   : > { %v1793_v59 = vmin.f32 %v1777_v53, 15.0  ;;  %v1686_v11 = vmul.f32 15.0, %v3499_v12  ;;  %3502 = vrcp.f32 %v1672_v46  ;;  %v1774_v37 = vmax.f32 %v3431_v48, 0.0 }
 0x1ec   : > { %v1779_v33 = vmax.f32 %v3436_v3, 0.0  ;;  %3185 = vmatpush3.bf16.msra.mxu1 %v4238_v9  ;;  %3504 = vrcp.f32 %v4158_v20  ;;  %v1728_v24 = vmul.f32 %v4171_v58, %v4077_v34  ;;  %v1807_v31 = vsub.f32 %v1791_v22, %v4191_v4 }
 0x1ed   : > { %v1695_v60 = vmin.f32 %v1686_v11, 20000.0  ;;  %3186 = vmatprep.subr.bf16.mxu1 %v3580_v25  ;;  %v1790_v44 = vmin.f32 %v1774_v37, 15.0  ;;  %3506 = vrcp.f32 %v4171_v58  ;;  %v1730_v27 = vmul.f32 %v4204_v14, %v4092_v43 }
 0x1ee   : > { %v3501_v2 = vpop.eup %3500  ;;  %v1795_v57 = vmin.f32 %v1779_v33, 15.0  ;;  %v1744_v54 = vadd.f32 %v4191_v4, %v1728_v24  ;;  %v1809_v20 = vsub.f32 %v1793_v59, %v4214_v18  ;;  %3508 = vrcp.f32 %v4204_v14 }
 0x1ef   : > { %v1711_v34 = vmul.f32 %v1703_v52, %v1695_v60  ;;  %v1733_v22 = vmul.f32 %v1695_v60, %v4129_v21  ;;  %v1835_v63 = vmul.f32 %v3501_v2, %v1803_v17  ;;  %v1836_v15 = vmul.f32 %v3501_v2, %v1804_v0 }
 0x1f0   : > { %v1806_v58 = vsub.f32 %v1790_v44, %v4169_v41  ;;  %v3433_v49 = vround.rtne.f32 %v1744_v54  ;;  %v1746_v43 = vadd.f32 %v4214_v18, %v1730_v27  ;;  %v1732_v8 = vmul.f32 %v4211_v50, %v4101_v61 }
 0x1f1   : > { %v4263_v29 = vround.rtne.f32 %v1711_v34  ;;  %v1864_v62 = vand.u32 4294901760, %v1835_v63  ;;  %v1867_v42 = vand.u32 4294901760, %v1836_v15  ;;  %v1811_v14 = vsub.f32 %v1795_v57, %v4226_v5 }
 0x1f2   : > { %v1776_v1 = vmax.f32 %v3433_v49, 0.0  ;;  %v3435_v52 = vround.rtne.f32 %v1746_v43  ;;  %v1748_v21 = vadd.f32 %v4226_v5, %v1732_v8  ;;  %3510 = vrcp.f32 %v4211_v50 }
 0x1f3   : > { %v1749_v41 = vadd.f32 %v4263_v29, %v1733_v22  ;;  %v4269_v17 = vpack.c.bf16 %v1867_v42, %v1864_v62  ;;  %v4271_v6 = vsub.f32 %v1835_v63, %v1864_v62  ;;  %v4273_v0 = vsub.f32 %v1836_v15, %v1867_v42 }
 0x1f4   : > { %v1792_v61 = vmin.f32 %v1776_v1, 15.0  ;;  %v1778_v32 = vmax.f32 %v3435_v52, 0.0  ;;  %v3437_v36 = vround.rtne.f32 %v1748_v21  ;;  %v1734_v55 = vmul.f32 %v1695_v60, %v4122_v23 }
 0x1f5   : > { %v3503_v10 = vpop.eup %3502  ;;  %v3438_v35 = vround.rtne.f32 %v1749_v41  ;;  %3188 = vmatpush3.bf16.msra.mxu1 %v4269_v17  ;;  %3512 = vrcp.f32 %v1695_v60  ;;  %v1951_v50 = vand.u32 4294901760, %v4240_v19  ;;  %v1958_v38 = vand.u32 4294901760, %v4242_v47 }
 0x1f6   : > { %v3505_v53 = vpop.eup %3504  ;;  %v1688_v46 = vmul.f32 15.0, %v3503_v10  ;;  %3189 = vmatprep.subr.bf16.mxu1 %v3580_v25  ;;  %v1808_v48 = vsub.f32 %v1792_v61, %v4191_v4  ;;  %v1794_v12 = vmin.f32 %v1778_v32, 15.0  ;;  %v1780_v3 = vmax.f32 %v3437_v36, 0.0 }
 0x1f7   : > { %v3507_v59 = vpop.eup %3506  ;;  %v1781_v11 = vmax.f32 %v3438_v35, 0.0  ;;  %v1837_v23 = vmul.f32 %v3505_v53, %v4234_v39  ;;  %v1838_v37 = vmul.f32 %v3505_v53, %v1806_v58  ;;  %v1750_v33 = vadd.f32 %v4263_v29, %v1734_v55 }
 0x1f8   : > { %v3509_v24 = vpop.eup %3508  ;;  %v1696_v60 = vmin.f32 %v1688_v46, 20000.0  ;;  %v1839_v44 = vmul.f32 %v3507_v59, %v1807_v31  ;;  %v1840_v27 = vmul.f32 %v3507_v59, %v1808_v48  ;;  %v1810_v2 = vsub.f32 %v1794_v12, %v4214_v18 }
 0x1f9   : > { %v1797_v57 = vmin.f32 %v1781_v11, 15.0  ;;  %v1870_v54 = vand.u32 4294901760, %v1837_v23  ;;  %v1873_v34 = vand.u32 4294901760, %v1838_v37  ;;  %v1841_v22 = vmul.f32 %v3509_v24, %v1809_v20 }
 0x1fa   : > { %v1712_v4 = vmul.f32 %v1704_v13, %v1696_v60  ;;  %v1735_v63 = vmul.f32 %v1696_v60, %v4188_v56  ;;  %v1876_v15 = vand.u32 4294901760, %v1839_v44  ;;  %v1879_v39 = vand.u32 4294901760, %v1840_v27 }
 0x1fb   : > { %v4287_v58 = vpack.c.bf16 %v1873_v34, %v1870_v54  ;;  %v4289_v49 = vsub.f32 %v1837_v23, %v1870_v54  ;;  %v4291_v43 = vsub.f32 %v1838_v37, %v1873_v34  ;;  %v1842_v31 = vmul.f32 %v3509_v24, %v1810_v2 }
 0x1fc   : > { %v3511_v8 = vpop.eup %3510  ;;  %v3425_v18 = vround.rtne.f32 %v1712_v4  ;;  %v4293_v62 = vpack.c.bf16 %v1879_v39, %v1876_v15  ;;  %v4295_v42 = vsub.f32 %v1839_v44, %v1876_v15  ;;  %v4297_v20 = vsub.f32 %v1840_v27, %v1879_v39 }
 0x1fd   : > { %3191 = vmatpush3.bf16.msra.mxu1 %v4287_v58  ;;  %v1882_v56 = vand.u32 4294901760, %v1841_v22  ;;  %v1885_v7 = vand.u32 4294901760, %v1842_v31  ;;  %v1796_v13 = vmin.f32 %v1780_v3, 15.0  ;;  %v1843_v1 = vmul.f32 %v3511_v8, %v1811_v14 }
 0x1fe   : > { %v1751_v52 = vadd.f32 %v3425_v18, %v1735_v63  ;;  %3192 = vmatprep.subr.bf16.mxu1 %v3580_v25  ;;  %v3439_v21 = vround.rtne.f32 %v1750_v33  ;;  %v1813_v41 = vsub.f32 %v1797_v57, %v4263_v29  ;;  %v1736_v61 = vmul.f32 %v1696_v60, %v4173_v45 }
 0x1ff   : > { %v3513_v32 = vpop.eup %3512  ;;  %v4303_v36 = vpack.c.bf16 %v1885_v7, %v1882_v56  ;;  %v4305_v55 = vsub.f32 %v1841_v22, %v1882_v56  ;;  %v4307_v10 = vsub.f32 %v1842_v31, %v1885_v7  ;;  %v1812_v35 = vsub.f32 %v1796_v13, %v4226_v5 }
 0x200   : > { %v3440_v53 = vround.rtne.f32 %v1751_v52  ;;  %v1888_v46 = vand.u32 4294901760, %v1843_v1  ;;  %v1782_v14 = vmax.f32 %v3439_v21, 0.0  ;;  %v1845_v48 = vmul.f32 %v3513_v32, %v1813_v41 }
 0x201   : > { %3194 = vmatpush3.bf16.msra.mxu1 %v4293_v62  ;;  %v1844_v12 = vmul.f32 %v3511_v8, %v1812_v35  ;;  %v1752_v3 = vadd.f32 %v3425_v18, %v1736_v61  ;;  %3514 = vrcp.f32 %v1696_v60  ;;  %v1952_v45 = vsub.f32 %v4240_v19, %v1951_v50 }
 0x202   : > { %v1783_v59 = vmax.f32 %v3440_v53, 0.0  ;;  %3195 = vmatprep.subr.bf16.mxu1 %v3580_v25  ;;  %v4315_v11 = vsub.f32 %v1843_v1, %v1888_v46  ;;  %v1798_v23 = vmin.f32 %v1782_v14, 15.0  ;;  %v1894_v5 = vand.u32 4294901760, %v1845_v48 }
 0x203   : > { %v1891_v37 = vand.u32 4294901760, %v1844_v12  ;;  %v3441_v33 = vround.rtne.f32 %v1752_v3  ;;  %v1953_v24 = vand.u32 4294901760, %v1952_v45  ;;  %v1959_v44 = vsub.f32 %v4242_v47, %v1958_v38 }
 0x204   : > { %v1799_v27 = vmin.f32 %v1783_v59, 15.0  ;;  %v1814_v60 = vsub.f32 %v1798_v23, %v4263_v29  ;;  %v4321_v2 = vsub.f32 %v1845_v48, %v1894_v5  ;;  %v1965_v57 = vand.u32 4294901760, %v4271_v6 }
 0x205   : > { %3197 = vmatpush3.bf16.msra.mxu1 %v4303_v36  ;;  %v4325_v54 = vpack.c.bf16 %v1891_v37, %v1888_v46  ;;  %v4327_v34 = vsub.f32 %v1844_v12, %v1891_v37  ;;  %v1784_v22 = vmax.f32 %v3441_v33, 0.0  ;;  %v1960_v4 = vand.u32 4294901760, %v1959_v44 }
 0x206   : > { %3198 = vmatprep.subr.bf16.mxu1 %v3580_v25  ;;  %v1846_v63 = vmul.f32 %v3513_v32, %v1814_v60  ;;  %v1815_v15 = vsub.f32 %v1799_v27, %v3425_v18  ;;  %v1966_v29 = vsub.f32 %v4271_v6, %v1965_v57  ;;  %v1972_v39 = vand.u32 4294901760, %v4273_v0 }
 0x207   : > { %v1800_v31 = vmin.f32 %v1784_v22, 15.0  ;;  %v4334_v8 = vpack.c.bf16 %v1960_v4, %v1953_v24  ;;  %v1979_v56 = vand.u32 4294901760, %v4289_v49  ;;  %v4567_v7 = vand.u32 4294901760, %v4291_v43 }
 0x208   : > { %v1897_v13 = vand.u32 4294901760, %v1846_v63  ;;  %v1967_v1 = vand.u32 4294901760, %v1966_v29  ;;  %v1973_v52 = vsub.f32 %v4273_v0, %v1972_v39  ;;  %v4566_v21 = vand.u32 4294901760, %v4295_v42 }
 0x209   : > { %3200 = vmatpush3.bf16.msra.mxu1 %v4325_v54  ;;  %v1816_v41 = vsub.f32 %v1800_v31, %v3425_v18  ;;  %v1980_v61 = vsub.f32 %v4289_v49, %v1979_v56  ;;  %v1987_v32 = vsub.f32 %v4291_v43, %v4567_v7  ;;  %v4565_v35 = vand.u32 4294901760, %v4297_v20 }
 0x20a   : > { %3201 = vmatprep.subr.bf16.mxu1 %v3580_v25  ;;  %v4351_v53 = vpack.c.bf16 %v1897_v13, %v1894_v5  ;;  %v4353_v46 = vsub.f32 %v1846_v63, %v1897_v13  ;;  %v1974_v14 = vand.u32 4294901760, %v1973_v52  ;;  %v1994_v18 = vsub.f32 %v4295_v42, %v4566_v21 }
 0x20b   : > { %v3515_v48 = vpop.eup %3514  ;;  %v1981_v12 = vand.u32 4294901760, %v1980_v61  ;;  %v1988_v3 = vand.u32 4294901760, %v1987_v32  ;;  %v2001_v45 = vsub.f32 %v4297_v20, %v4565_v35  ;;  %v2007_v59 = vand.u32 4294901760, %v4305_v55 }
 0x20c   : > { %v1847_v23 = vmul.f32 %v3515_v48, %v1815_v15  ;;  %v1848_v37 = vmul.f32 %v3515_v48, %v1816_v41  ;;  %v3211_v5 = vpack.c.bf16 %v1974_v14, %v1967_v1  ;;  %v1995_v33 = vand.u32 4294901760, %v1994_v18 }
 0x20d   : > { %3203 = vmatpush3.bf16.msra.mxu1 %v4351_v53  ;;  %v3214_v24 = vpack.c.bf16 %v1988_v3, %v1981_v12  ;;  %v2002_v44 = vand.u32 4294901760, %v2001_v45  ;;  %v2008_v27 = vsub.f32 %v4305_v55, %v2007_v59  ;;  %v2014_v60 = vand.u32 4294901760, %v4307_v10 }
 0x20e   : > { %3204 = vmatprep.subr.bf16.mxu1 %v3580_v25  ;;  %v1900_v22 = vand.u32 4294901760, %v1847_v23  ;;  %v1903_v4 = vand.u32 4294901760, %v1848_v37  ;;  %v2021_v63 = vand.u32 4294901760, %v4315_v11  ;;  %v2028_v29 = vand.u32 4294901760, %v4327_v34 }
 0x20f   : > { %v3217_v15 = vpack.c.bf16 %v2002_v44, %v1995_v33  ;;  %v2009_v31 = vand.u32 4294901760, %v2008_v27  ;;  %v2015_v13 = vsub.f32 %v4307_v10, %v2014_v60  ;;  %v2035_v1 = vand.u32 4294901760, %v4321_v2 }
 0x210   : > { %v4370_v52 = vpack.c.bf16 %v1903_v4, %v1900_v22  ;;  %v4372_v41 = vsub.f32 %v1847_v23, %v1900_v22  ;;  %v4374_v61 = vsub.f32 %v1848_v37, %v1903_v4  ;;  %v2022_v32 = vsub.f32 %v4315_v11, %v2021_v63 }
 0x211   : > { %v2016_v14 = vand.u32 4294901760, %v2015_v13  ;;  %v2029_v18 = vsub.f32 %v4327_v34, %v2028_v29  ;;  %v2036_v48 = vsub.f32 %v4321_v2, %v2035_v1  ;;  %v2042_v12 = vand.u32 4294901760, %v4353_v46 }
 0x212   : > { %3206 = vmatpush3.bf16.msra.mxu1 %v4370_v52  ;;  %v2023_v3 = vand.u32 4294901760, %v2022_v32  ;;  %v2049_v45 = vand.u32 4294901760, %v4372_v41  ;;  %v2056_v33 = vand.u32 4294901760, %v4374_v61  ;;  %v3232_v23 = vpack.c.bf16 %v4242_v47, %v4240_v19 }
 0x213   : > { %3207 = vmatprep.subr.bf16.mxu1 %v3580_v25  ;;  %v3220_v37 = vpack.c.bf16 %v2016_v14, %v2009_v31  ;;  %v2030_v44 = vand.u32 4294901760, %v2029_v18  ;;  %v2037_v27 = vand.u32 4294901760, %v2036_v48  ;;  %v2043_v22 = vsub.f32 %v4353_v46, %v2042_v12 }
 0x214   : > { %v2050_v4 = vsub.f32 %v4372_v41, %v2049_v45  ;;  %v2057_v13 = vsub.f32 %v4374_v61, %v2056_v33  ;;  %v3235_v32 = vpack.c.bf16 %v4273_v0, %v4271_v6  ;;  %v3238_v51 = vpack.c.bf16 %v4291_v43, %v4289_v49 }
 0x215   : > { %3006 = vmatmul.mubr.f32.vlgmr.msra.gmra.mrb[0].mxu1 %v1942_v16  ;;  %v3223_v35 = vpack.c.bf16 %v2030_v44, %v2023_v3  ;;  %v2044_v21 = vand.u32 4294901760, %v2043_v22  ;;  %v3241_v31 = vpack.c.bf16 %v4297_v20, %v4295_v42  ;;  %v3244_v14 = vpack.c.bf16 %v4307_v10, %v4305_v55 }
 0x216   : > { %3209 = vmatpush3.bf16.msra.mxu1 %v4334_v8  ;;  %v2051_v18 = vand.u32 4294901760, %v2050_v4  ;;  %v2058_v48 = vand.u32 4294901760, %v2057_v13  ;;  %3040 = vmatprep.mubr.msk.f32.mxu1 %vm3581_vm1, %v3582_v26  ;;  %v3247_v7 = vpack.c.bf16 %v4327_v34, %v4315_v11  ;;  %v3250_v28 = vpack.c.bf16 %v4353_v46, %v4321_v2 }
 0x217   : > { %3210 = vmatprep.subr.bf16.mxu1 %v3580_v25  ;;  %v3226_v16 = vpack.c.bf16 %v2044_v21, %v2037_v27  ;;  %v3253_v3 = vpack.c.bf16 %v4374_v61, %v4372_v41  ;;  %v3280_v55 = vpack.c.bf16 %v1958_v38, %v1951_v50  ;;  %v3283_v10 = vpack.c.bf16 %v1972_v39, %v1965_v57 }
 0x218   : > { %v3229_v11 = vpack.c.bf16 %v2058_v48, %v2051_v18  ;;  %v4570_v2 = vand.u32 4294901760, %v4291_v43  ;;  %v4571_v8 = vand.u32 4294901760, %v4295_v42  ;;  %v4572_v21 = vand.u32 4294901760, %v4297_v20 }
 0x219   : > { %v4425_v19 = vpack.c.bf16 %v2014_v60, %v2007_v59  ;;  %v4427_v47 = vpack.c.bf16 %v2028_v29, %v2021_v63  ;;  %v4429_v50 = vpack.c.bf16 %v2042_v12, %v2035_v1  ;;  %v4431_v6 = vpack.c.bf16 %v2056_v33, %v2049_v45 }
 0x21a   : > { %v3286_v34 = vpack.c.bf16 %v4570_v2, %v1979_v56  ;;  %v3289_v46 = vpack.c.bf16 %v4572_v21, %v4571_v8  ;;  %3212 = vmatpush3.bf16.msra.mxu1 %v3211_v5 }
 0x21b   : > { %3213 = vmatprep.subr.bf16.mxu1 %v3580_v25 }
 0x21e   : > { %3215 = vmatpush3.bf16.msra.mxu1 %v3214_v24 }
 0x21f   : > { %3216 = vmatprep.subr.bf16.mxu1 %v3580_v25 }
 0x222   : > { %3218 = vmatpush3.bf16.msra.mxu1 %v3217_v15 }
 0x223   : > { %3219 = vmatprep.subr.bf16.mxu1 %v3580_v25 }
 0x226   : > { %3221 = vmatpush3.bf16.msra.mxu1 %v3220_v37 }
 0x227   : > { %3222 = vmatprep.subr.bf16.mxu1 %v3580_v25 }
 0x22a   : > { %3224 = vmatpush3.bf16.msra.mxu1 %v3223_v35 }
 0x22b   : > { %3225 = vmatprep.subr.bf16.mxu1 %v3580_v25 }
 0x22e   : > { %3227 = vmatpush3.bf16.msra.mxu1 %v3226_v16 }
 0x22f   : > { %3228 = vmatprep.subr.bf16.mxu1 %v3580_v25 }
 0x232   : > { %3230 = vmatpush3.bf16.msra.mxu1 %v3229_v11 }
 0x233   : > { %3231 = vmatprep.subr.bf16.mxu1 %v3580_v25 }
 0x235   : > { %3041 = vmatmul.mubr.f32.vlgmr.msra.gmra.mrb[0].mxu1 %v4031_v30 }
 0x236   : > { %3233 = vmatpush3.bf16.msra.mxu1 %v3232_v23  ;;  %3075 = vmatprep.mubr.msk.f32.mxu1 %vm3581_vm1, %v3582_v26 }
 0x237   : > { %3234 = vmatprep.subr.bf16.mxu1 %v3580_v25 }
 0x23a   : > { %3236 = vmatpush3.bf16.msra.mxu1 %v3235_v32 }
 0x23b   : > { %3237 = vmatprep.subr.bf16.mxu1 %v3580_v25 }
 0x23e   : > { %3239 = vmatpush3.bf16.msra.mxu1 %v3238_v51  ;;  %v4573_v51 = vand.u32 4294901760, %v4038_v40 }
 0x23f   : > { %3240 = vmatprep.subr.bf16.mxu1 %v3580_v25 }
 0x242   : > { %3242 = vmatpush3.bf16.msra.mxu1 %v3241_v31 }
 0x243   : > { %3243 = vmatprep.subr.bf16.mxu1 %v3580_v25 }
 0x246   : > { %3245 = vmatpush3.bf16.msra.mxu1 %v3244_v14 }
 0x247   : > { %3246 = vmatprep.subr.bf16.mxu1 %v3580_v25 }
 0x24a   : > { %3248 = vmatpush3.bf16.msra.mxu1 %v3247_v7 }
 0x24b   : > { %3249 = vmatprep.subr.bf16.mxu1 %v3580_v25 }
 0x24e   : > { %3251 = vmatpush3.bf16.msra.mxu1 %v3250_v28 }
 0x24f   : > { %3252 = vmatprep.subr.bf16.mxu1 %v3580_v25 }
 0x252   : > { %3254 = vmatpush3.bf16.msra.mxu1 %v3253_v3 }
 0x253   : > { %3255 = vmatprep.subr.bf16.mxu1 %v3580_v25 }
 0x255   : > { %3076 = vmatmul.mubr.f32.vlgmr.msra.gmra.mrb[0].mxu1 %v4038_v40 }
 0x256   : > { %3257 = vmatpush3.bf16.msra.mxu1 %v4238_v9  ;;  %3110 = vmatprep.mubr.msk.f32.mxu1 %vm3581_vm1, %v3582_v26 }
 0x257   : > { %3258 = vmatprep.subr.bf16.mxu1 %v3580_v25 }
 0x25a   : > { %3260 = vmatpush3.bf16.msra.mxu1 %v4269_v17 }
 0x25b   : > { %3261 = vmatprep.subr.bf16.mxu1 %v3580_v25 }
 0x25e   : > { %3263 = vmatpush3.bf16.msra.mxu1 %v4287_v58 }
 0x25f   : > { %3264 = vmatprep.subr.bf16.mxu1 %v3580_v25 }
 0x262   : > { %3266 = vmatpush3.bf16.msra.mxu1 %v4293_v62 }
 0x263   : > { %3267 = vmatprep.subr.bf16.mxu1 %v3580_v25 }
 0x266   : > { %3269 = vmatpush3.bf16.msra.mxu1 %v4303_v36 }
 0x267   : > { %3270 = vmatprep.subr.bf16.mxu1 %v3580_v25 }
 0x26a   : > { %3272 = vmatpush3.bf16.msra.mxu1 %v4325_v54 }
 0x26b   : > { %3273 = vmatprep.subr.bf16.mxu1 %v3580_v25 }
 0x26e   : > { %3275 = vmatpush3.bf16.msra.mxu1 %v4351_v53 }
 0x26f   : > { %3276 = vmatprep.subr.bf16.mxu1 %v3580_v25 }
 0x272   : > { %3278 = vmatpush3.bf16.msra.mxu1 %v4370_v52 }
 0x273   : > { %3279 = vmatprep.subr.bf16.mxu1 %v3580_v25 }
 0x275   : > { %3111 = vmatmul.mubr.f32.vlgmr.msra.gmra.mrb[0].mxu1 %v4573_v51 }
 0x276   : > { %3281 = vmatpush3.bf16.msra.mxu1 %v3280_v55  ;;  %3145 = vmatprep.mubr.msk.f32.mxu1 %vm3581_vm1, %v3582_v26 }
 0x277   : > { %3282 = vmatprep.subr.bf16.mxu1 %v3580_v25 }
 0x27a   : > { %3284 = vmatpush3.bf16.msra.mxu1 %v3283_v10 }
 0x27b   : > { %3285 = vmatprep.subr.bf16.mxu1 %v3580_v25 }
 0x27e   : > { %3287 = vmatpush3.bf16.msra.mxu1 %v3286_v34 }
 0x27f   : > { %3288 = vmatprep.subr.bf16.mxu1 %v3580_v25 }
 0x282   : > { %3290 = vmatpush3.bf16.msra.mxu1 %v3289_v46 }
 0x283   : > { %3291 = vmatprep.subr.bf16.mxu1 %v3580_v25 }
 0x286   : > { %3293 = vmatpush3.bf16.msra.mxu1 %v4425_v19 }
 0x287   : > { %3294 = vmatprep.subr.bf16.mxu1 %v3580_v25 }
 0x28a   : > { %3296 = vmatpush3.bf16.msra.mxu1 %v4427_v47 }
 0x28b   : > { %3297 = vmatprep.subr.bf16.mxu1 %v3580_v25 }
 0x28e   : > { %3299 = vmatpush3.bf16.msra.mxu1 %v4429_v50 }
 0x28f   : > { %3300 = vmatprep.subr.bf16.mxu1 %v3580_v25 }
 0x292   : > { %3302 = vmatpush3.bf16.msra.mxu1 %v4431_v6 }
 0x293   : > { %3303 = vmatprep.subr.bf16.mxu1 %v3580_v25 }
 0x295   : > { %3146 = vmatmul.mubr.f32.vlgmr.msra.gmra.mrb[0].mxu1 %v4031_v30 }
 0x296   : > { %3305 = vmatpush3.bf16.msra.mxu1 %v4238_v9  ;;  %3180 = vmatprep.mubr.msk.f32.mxu1 %vm3581_vm1, %v3582_v26  ;;  %v2608_v26 = vld [vmem:[%s347_s11] ss:$0 sm:$0xff] }
 0x297   : > { %3306 = vmatprep.subr.bf16.mxu1 %v3580_v25 }
 0x29a   : > { %3308 = vmatpush3.bf16.msra.mxu1 %v4269_v17 }
 0x29b   : > { %3309 = vmatprep.subr.bf16.mxu1 %v3580_v25 }
 0x29e   : > { %3311 = vmatpush3.bf16.msra.mxu1 %v4287_v58 }
 0x29f   : > { %3312 = vmatprep.subr.bf16.mxu1 %v3580_v25 }
 0x2a2   : > { %3314 = vmatpush3.bf16.msra.mxu1 %v4293_v62 }
 0x2a3   : > { %3315 = vmatprep.subr.bf16.mxu1 %v3580_v25 }
 0x2a6   : > { %3317 = vmatpush3.bf16.msra.mxu1 %v4303_v36 }
 0x2a7   : > { %3318 = vmatprep.subr.bf16.mxu1 %v3580_v25 }
 0x2aa   : > { %3320 = vmatpush3.bf16.msra.mxu1 %v4325_v54 }
 0x2ab   : > { %3321 = vmatprep.subr.bf16.mxu1 %v3580_v25 }
 0x2ae   : > { %3323 = vmatpush3.bf16.msra.mxu1 %v4351_v53 }
 0x2af   : > { %3324 = vmatprep.subr.bf16.mxu1 %v3580_v25 }
 0x2b2   : > { %3326 = vmatpush3.bf16.msra.mxu1 %v4370_v52 }
 0x2b5   : > { %3181 = vmatmul.mubr.f32.vlgmr.msra.gmra.mrb[0].mxu1 %v4031_v30 }
 0x388   : > { %v2494_v40 = vpop.f32.mrb[0].mxu1 }
 0x389   : > { %v3327_v9 = vadd.f32 %v2608_v26, %v2494_v40  ;;  %v3182_v17 = vpop.f32.mrb[1].mxu1 }
 0x38b   : > { %2498 = vst [vmem:[%s340_s13] sm:$0xff] %v3327_v9 }
 0x38c   : > { %3529 = shalt.err (!%p3526_p7)
}
 0x38d   : > { %s3530_s23 = scalar_lea.hbm %s4514_s17, 128  ;;  %s3534_s9 = scalar_lea.hbm %s4563_s5, 256 }
 0x38e   : > { %p3531_p10 = scmp.ne.s32.totalorder %s4514_s17, %s3530_s23  ;;  %p3535_p13 = scmp.lt.u32.totalorder %s4514_s17, %s4563_s5 }
 0x38f   : > { %p3536_p0 = scmp.lt.u32.totalorder %s3534_s9, %s3530_s23  ;;  %p3538_p2 = scmp.lt.u32.totalorder %s3530_s23, %s4514_s17 }
 0x390   : > { %p3532_p11 = pnand %p3531_p10, %p3653_p6 }
 0x391   : > { %p3537_p1 = por %p3536_p0, %p3535_p13 }
 0x392   : > { %p3533_p12 = pneg %p3532_p11 }
 0x393   : > { %p3539_p3 = por %p3538_p2, %p3537_p1 }
 0x395   : > { %p3540_p4 = pnand %p3539_p3, %p3533_p12 }
 0x397   : > { %3543 = shalt.err (!%p3540_p4)
}
 0x398   : > { %3442 = dma.vmem_to_hbm [thread:$0]  (%p3653_p6), %s4516_s14, 128, %s4514_s17, %s2500_s25  }
 0x399 PF: > { %s2525_s12 = sand.u32 1, %s3566_s18   ;;  %p3445_p5 = pnand %p2601_p9, %p3657_p8 }
 0x39a   : > { %s2526_s13 = scalar_lea.sflag [#allocation4], %s2525_s12 }
 0x39b   : > { %3561 = dma.done.wait (!%p3445_p5), %s2526_s13, 128  }
 0x39c   : > { %3563 = vsyncadd (!%p3445_p5), %s2526_s13, 4294967168  ;;  %p15_p7 = scmp.ge.s32.totalorder %s3639_s24, 4   ;;  %s4574_s18 = smov %s3570_s19 }
 0x39d   : > { %s4575_s19 = smov %s3574_s20  ;;  %s4576_s20 = smov %s3651_s27 }
 0x39e   : > { %s4577_s21 = smov %s3639_s24  ;;  %17 = sbr.rel (!%p15_p7) target bundleno = 3 (0x3), region = 124 }
 0x3a5   :  { %2531 = vsyncpa [#allocation4], 1 }
 0x3a6   :  { %2533 = vsyncpa [#allocation4 + $0x1], 1 }

</bundles_post_ra>
